<compile_context>
chip_gen: v5e
topology: v5e:2x2
jax: 0.10.0
libtpu: 0.0.40
codegen_flags: <defaults>
</compile_context>

<pallas_src>
import functools

import jax
import jax.numpy as jnp
from jax.experimental import pallas as pl
from jax.experimental.pallas import tpu as pltpu

BN_EPS = 1e-5
LEAKY_SLOPE = 0.1


# ---------------------------------------------------------------------------
# Per-generation VMEM budget (v7x: 64 MiB physical, v5e/v6e: 128 MiB; the scoped
# default can be as low as 16 MiB, so always set the limit explicitly).
# ---------------------------------------------------------------------------
def _vmem_budget_bytes():
    try:
        phys = pltpu.get_tpu_info().vmem_capacity_bytes
        return int(min(phys * 3 // 4, 100 * 1024 * 1024))
    except Exception:
        return 48 * 1024 * 1024          # safe on every generation


def _compiler_params(vmem_bytes):
    return pltpu.CompilerParams(
        dimension_semantics=("parallel", "parallel"),
        vmem_limit_bytes=int(vmem_bytes),
    )


def _auto_tile_h(n, h, width, cin, cout, vmem_bytes):
    """Largest row tile (multiple of 8, dividing H) whose working set fits VMEM."""
    # Rough per-row bytes of a conv pass: double-buffered bf16 input/output tiles,
    # bf16 halo copy, K-folded im2col window (+ slice temporaries), f32 accumulator.
    per_row = width * (2 * 2 * cin + 2 * 2 * cout + 2 * cin
                       + 2 * 2 * 9 * cin + 4 * cout)
    cap = max(8, (vmem_bytes // 2) // max(per_row, 1))
    best = None
    for t in range(8, h + 1, 8):
        if h % t:
            continue
        if t > cap:
            continue
        if n == 1 and t == h and h > 8:
            # keep >= 2 grid steps on the H axis so both v7x TensorCores get work
            continue
        best = t
    return best if best is not None else h


def _fold_weights(w_oihw):
    """(Cout, Cin, 3, 3) -> (9*Cin, Cout) bf16, K ordered (kh, kw, cin)."""
    cout, cin = w_oihw.shape[0], w_oihw.shape[1]
    return (jnp.transpose(w_oihw, (2, 3, 1, 0))        # (3, 3, Cin, Cout)
            .reshape(9 * cin, cout).astype(jnp.bfloat16))


# ---------------------------------------------------------------------------
# Conv pass: (optional fused input BN+LeakyReLU) + 3x3 conv as ONE K-folded MXU
# GEMM per tile + BN partial statistics from the f32 accumulator.
# ---------------------------------------------------------------------------
def _conv_stats_kernel(*refs, fuse_in_act):
    if fuse_in_act:
        xc_ref, xu_ref, xd_ref, w_ref, sc_ref, sh_ref, y_ref, st_ref = refs
    else:
        xc_ref, xu_ref, xd_ref, w_ref, y_ref, st_ref = refs
        sc_ref = sh_ref = None

    tile_h, width, cin = xc_ref.shape
    cout = w_ref.shape[1]
    i = pl.program_id(1)
    n_h = pl.num_programs(1)

    def prep(v):
        # Previous layer's folded BatchNorm + LeakyReLU applied on the load path.
        if fuse_in_act:
            z = v.astype(jnp.float32) * sc_ref[...] + sh_ref[...]
            z = jnp.maximum(z, LEAKY_SLOPE * z)
            return z.astype(jnp.bfloat16)
        return v.astype(jnp.bfloat16)

    xc = prep(xc_ref[...])
    top = prep(xu_ref[...])                 # 1-row halo blocks (not 8-row)
    bot = prep(xd_ref[...])
    # Zero the vertical halo at the image boundary (conv padding = 1); zero AFTER
    # the fused activation so padding stays exactly zero.
    top = jnp.where(i > 0, top, jnp.zeros_like(top))
    bot = jnp.where(i < n_h - 1, bot, jnp.zeros_like(bot))

    # Assemble (tile_h+2, W+2, Cin): H halo from neighbour rows, W halo zero-padded
    # in-kernel (no XLA pad pass, no padded intermediates in HBM).
    x_halo = jnp.concatenate([top, xc, bot], axis=0)
    zcol = jnp.zeros((tile_h + 2, 1, cin), x_halo.dtype)
    x_halo = jnp.concatenate([zcol, x_halo, zcol], axis=1)

    # K-folded im2col: one GEMM with K = 9*Cin instead of nine GEMMs with K = Cin.
    cols = [x_halo[kh:kh + tile_h, kw:kw + width, :]
            for kh in range(3) for kw in range(3)]
    win = jnp.concatenate(cols, axis=-1).reshape(tile_h * width, 9 * cin)
    acc = jnp.dot(win, w_ref[...], preferred_element_type=jnp.float32)

    # Raw conv output stored bf16; BN partial sums taken from the f32 accumulator.
    y_ref[...] = acc.reshape(tile_h, width, cout).astype(y_ref.dtype)
    st_ref[...] = jnp.concatenate(
        [jnp.sum(acc, axis=0, keepdims=True),
         jnp.sum(acc * acc, axis=0, keepdims=True)], axis=0)


def _conv_pass(x, w_folded, scale_in, shift_in, *, tile_h, vmem_bytes):
    """x: (N, H, W, Cin) bf16 (raw conv output of previous layer when fused)."""
    n, h, width, cin = x.shape
    cout = w_folded.shape[1]
    assert h % tile_h == 0
    n_h = h // tile_h
    fuse = scale_in is not None

    def xc_map(b, i):
        return (b, i, 0, 0)

    def xu_map(b, i):                       # row just above the tile (clamped)
        return (b, jnp.maximum(i * tile_h - 1, 0), 0, 0)

    def xd_map(b, i):                       # row just below the tile (clamped)
        return (b, jnp.minimum((i + 1) * tile_h, h - 1), 0, 0)

    in_specs = [
        pl.BlockSpec((None, tile_h, width, cin), xc_map),
        pl.BlockSpec((None, 1, width, cin), xu_map),
        pl.BlockSpec((None, 1, width, cin), xd_map),
        pl.BlockSpec((9 * cin, cout), lambda b, i: (0, 0)),
    ]
    args = [x, x, x, w_folded]
    if fuse:
        in_specs += [pl.BlockSpec((1, cin), lambda b, i: (0, 0)),
                     pl.BlockSpec((1, cin), lambda b, i: (0, 0))]
        args += [scale_in, shift_in]

    y, stats = pl.pallas_call(
        functools.partial(_conv_stats_kernel, fuse_in_act=fuse),
        grid=(n, n_h),
        in_specs=in_specs,
        out_specs=[
            pl.BlockSpec((None, tile_h, width, cout), lambda b, i: (b, i, 0, 0)),
            pl.BlockSpec((None, None, 2, cout), lambda b, i: (b, i, 0, 0)),
        ],
        out_shape=[
            jax.ShapeDtypeStruct((n, h, width, cout), jnp.bfloat16),
            jax.ShapeDtypeStruct((n, n_h, 2, cout), jnp.float32),
        ],
        compiler_params=_compiler_params(vmem_bytes),
    )(*args)
    return y, stats


# ---------------------------------------------------------------------------
# Tiny XLA reduction: partial sums -> folded training-mode BN scale/shift
# (biased variance, eps=1e-5 — matches PyTorch BatchNorm2d forward in training).
# ---------------------------------------------------------------------------
def _fold_bn(stats, gamma, beta, count):
    tot = jnp.sum(stats, axis=(0, 1))                       # (2, Cout)
    mean = tot[0] / count
    var = jnp.maximum(tot[1] / count - mean * mean, 0.0)
    scale = gamma.astype(jnp.float32) * jax.lax.rsqrt(var + BN_EPS)
    shift = beta.astype(jnp.float32) - mean * scale
    return scale.reshape(1, -1), shift.reshape(1, -1)


# ---------------------------------------------------------------------------
# Final BatchNorm + LeakyReLU (only the last layer keeps a standalone pass).
# ---------------------------------------------------------------------------
def _bn_act_kernel(y_ref, sc_ref, sh_ref, o_ref):
    z = y_ref[...].astype(jnp.float32) * sc_ref[...] + sh_ref[...]
    z = jnp.maximum(z, LEAKY_SLOPE * z)      # Dropout2d(p=0) is the identity
    o_ref[...] = z.astype(o_ref.dtype)


def _bn_act_pass(y, scale, shift, *, tile_h, out_dtype, vmem_bytes):
    n, h, width, cout = y.shape
    n_h = h // tile_h
    return pl.pallas_call(
        _bn_act_kernel,
        grid=(n, n_h),
        in_specs=[
            pl.BlockSpec((None, tile_h, width, cout), lambda b, i: (b, i, 0, 0)),
            pl.BlockSpec((1, cout), lambda b, i: (0, 0)),
            pl.BlockSpec((1, cout), lambda b, i: (0, 0)),
        ],
        out_specs=pl.BlockSpec((None, tile_h, width, cout), lambda b, i: (b, i, 0, 0)),
        out_shape=jax.ShapeDtypeStruct((n, h, width, cout), out_dtype),
        compiler_params=_compiler_params(vmem_bytes),
    )(y, scale, shift)


# ---------------------------------------------------------------------------
# Full `Conv` block forward (public interface is NCHW, like PyTorch)
# ---------------------------------------------------------------------------
def conv_module_forward(x_nchw, params, *, tile_h=None, nchw_output=True):
    w1, g1, b1, w2, g2, b2 = params
    n, cin, h, width = x_nchw.shape
    cout = w1.shape[0]

    vmem_bytes = _vmem_budget_bytes()
    if tile_h is None:
        tile_h = _auto_tile_h(n, h, width, max(cin, cout), cout, vmem_bytes)
    assert h % tile_h == 0 and (tile_h % 8 == 0 or tile_h == h)

    # Single layout change at the block boundary: NCHW -> NHWC bf16 (fuses in XLA).
    x = jnp.transpose(x_nchw, (0, 2, 3, 1)).astype(jnp.bfloat16)

    w1f = _fold_weights(w1)
    w2f = _fold_weights(w2)
    cnt = jnp.float32(n * h * width)

    # Layer 1: conv + BN partial stats (raw conv output kept as a bf16 intermediate).
    y1, st1 = _conv_pass(x, w1f, None, None, tile_h=tile_h, vmem_bytes=vmem_bytes)
    sc1, sh1 = _fold_bn(st1, g1, b1, cnt)

    # Layer 2: layer-1 BN + LeakyReLU fused into this conv's load path.
    y2, st2 = _conv_pass(y1, w2f, sc1, sh1, tile_h=tile_h, vmem_bytes=vmem_bytes)
    sc2, sh2 = _fold_bn(st2, g2, b2, cnt)

    # Final BN + LeakyReLU.
    out = _bn_act_pass(y2, sc2, sh2, tile_h=tile_h, out_dtype=jnp.float32,
                       vmem_bytes=vmem_bytes)
    if nchw_output:
        out = jnp.transpose(out, (0, 3, 1, 2))           # NHWC -> NCHW (API parity)
    return out


# ---------------------------------------------------------------------------
# Pure-JAX references (for correctness checks)
# ---------------------------------------------------------------------------
def _ref_forward(x, params, *, cast_bf16):
    w1, g1, b1, w2, g2, b2 = params

    def layer(x, wt, g, b):
        lhs, rhs = x, wt
        if cast_bf16:                       # mirror the kernel's bf16 MXU inputs
            lhs = lhs.astype(jnp.bfloat16)
            rhs = rhs.astype(jnp.bfloat16)
        y = jax.lax.conv_general_dilated(
            lhs, rhs, (1, 1), "SAME",
            dimension_numbers=("NCHW", "OIHW", "NCHW"),
            preferred_element_type=jnp.float32)
        mean = y.mean(axis=(0, 2, 3), keepdims=True)
        var = ((y - mean) ** 2).mean(axis=(0, 2, 3), keepdims=True)
        if cast_bf16:                       # kernel keeps its conv intermediate in bf16
            y = y.astype(jnp.bfloat16).astype(jnp.float32)
        z = (y - mean) * jax.lax.rsqrt(var + BN_EPS) * g.reshape(1, -1, 1, 1) \
            + b.reshape(1, -1, 1, 1)
        return jnp.where(z >= 0.0, z, LEAKY_SLOPE * z)

    return layer(layer(x, w1, g1, b1), w2, g2, b2)


if __name__ == "__main__":
    # Conv(in_channels=4, out_channels=8, dp=0), input (N=2, C=4, H=16, W=16).
    in_channels, out_channels = 4, 8
    N, H, W = 2, 16, 16
    key = jax.random.PRNGKey(0)
    kx, kw1, kw2, kg1, kb1, kg2, kb2 = jax.random.split(key, 7)

    x = jax.random.normal(kx, (N, in_channels, H, W), dtype=jnp.float32)
    w1 = 0.1 * jax.random.normal(kw1, (out_channels, in_channels, 3, 3), jnp.float32)
    w2 = 0.1 * jax.random.normal(kw2, (out_channels, out_channels, 3, 3), jnp.float32)
    g1 = 1.0 + 0.1 * jax.random.normal(kg1, (out_channels,), jnp.float32)
    b1 = 0.1 * jax.random.normal(kb1, (out_channels,), jnp.float32)
    g2 = 1.0 + 0.1 * jax.random.normal(kg2, (out_channels,), jnp.float32)
    b2 = 0.1 * jax.random.normal(kb2, (out_channels,), jnp.float32)
    params = (w1, g1, b1, w2, g2, b2)

    ref_matched = _ref_forward(x, params, cast_bf16=True)   # same numerics as kernel
    ref_f32 = _ref_forward(x, params, cast_bf16=False)      # full-f32 PyTorch semantics

    # tile_h=8 exercises interior 1-row halos + boundaries; None = auto (full-H tile).
    for th in (8, None):
        out = jax.jit(functools.partial(conv_module_forward, tile_h=th))(x, params)
        out = jax.block_until_ready(out)
        assert out.shape == (N, out_channels, H, W)
        assert out.dtype == jnp.float32

        err_m = float(jnp.max(jnp.abs(out - ref_matched)))
        assert err_m < 5e-2, f"tile_h={th}: max abs err vs matched-precision ref: {err_m}"
        err_f = float(jnp.max(jnp.abs(out - ref_f32)))
        assert err_f < 0.15, f"tile_h={th}: max abs err vs f32 ref: {err_f}"

    print("KERNEL_OK")
</pallas_src>

<mosaic_0001>
module attributes {stable_mosaic.version = 11 : i64} {
  func.func @_conv_stats_kernel(%arg0: i32, %arg1: i32, %arg2: memref<1x8x16x4xbf16, #tpu.memory_space<vmem>>, %arg3: memref<1x1x16x4xbf16, #tpu.memory_space<vmem>>, %arg4: memref<1x1x16x4xbf16, #tpu.memory_space<vmem>>, %arg5: memref<36x8xbf16, #tpu.memory_space<vmem>>, %arg6: memref<1x8x16x8xbf16, #tpu.memory_space<vmem>>, %arg7: memref<1x1x2x8xf32, #tpu.memory_space<vmem>>) attributes {dimension_semantics = [#tpu.dimension_semantics<parallel>, #tpu.dimension_semantics<parallel>], iteration_bounds = array<i64: 2, 2>, scalar_prefetch = 0 : i64, scratch_operands = 0 : i64, tpu.core_type = #tpu.core_type<tc>, window_params = [{transform_indices = @transform_0, window_bounds = array<i64: 1, 8, 16, 4>}, {transform_indices = @transform_1, window_bounds = array<i64: 1, 1, 16, 4>}, {transform_indices = @transform_2, window_bounds = array<i64: 1, 1, 16, 4>}, {pipeline_mode = #tpu.pipeline_mode<synchronous>, transform_indices = @transform_3, window_bounds = array<i64: 36, 8>}, {transform_indices = @transform_4, window_bounds = array<i64: 1, 8, 16, 8>}, {transform_indices = @transform_5, window_bounds = array<i64: 1, 1, 2, 8>}]} {
    %c0 = arith.constant 0 : index
    %c0_0 = arith.constant 0 : index
    %c0_1 = arith.constant 0 : index
    %c0_2 = arith.constant 0 : index
    %0 = vector.load %arg2[%c0, %c0_0, %c0_1, %c0_2] : memref<1x8x16x4xbf16, #tpu.memory_space<vmem>>, vector<1x8x16x4xbf16>
    %1 = vector.shape_cast %0 : vector<1x8x16x4xbf16> to vector<8x16x4xbf16>
    %c0_3 = arith.constant 0 : index
    %c0_4 = arith.constant 0 : index
    %c0_5 = arith.constant 0 : index
    %c0_6 = arith.constant 0 : index
    %2 = vector.load %arg3[%c0_3, %c0_4, %c0_5, %c0_6] : memref<1x1x16x4xbf16, #tpu.memory_space<vmem>>, vector<1x1x16x4xbf16>
    %3 = vector.shape_cast %2 : vector<1x1x16x4xbf16> to vector<1x16x4xbf16>
    %c0_7 = arith.constant 0 : index
    %c0_8 = arith.constant 0 : index
    %c0_9 = arith.constant 0 : index
    %c0_10 = arith.constant 0 : index
    %4 = vector.load %arg4[%c0_7, %c0_8, %c0_9, %c0_10] : memref<1x1x16x4xbf16, #tpu.memory_space<vmem>>, vector<1x1x16x4xbf16>
    %5 = vector.shape_cast %4 : vector<1x1x16x4xbf16> to vector<1x16x4xbf16>
    %c0_i32 = arith.constant 0 : i32
    %6 = arith.cmpi sgt, %arg1, %c0_i32 : i32
    %cst = arith.constant 0.000000e+00 : bf16
    %7 = vector.broadcast %cst : bf16 to vector<1x16x4xbf16>
    %8 = arith.select %6, %3, %7 : vector<1x16x4xbf16>
    %c1_i32 = arith.constant 1 : i32
    %9 = arith.cmpi slt, %arg1, %c1_i32 : i32
    %cst_11 = arith.constant 0.000000e+00 : bf16
    %10 = vector.broadcast %cst_11 : bf16 to vector<1x16x4xbf16>
    %11 = arith.select %9, %5, %10 : vector<1x16x4xbf16>
    %12 = tpu.concatenate %8, %1, %11 in 0 : vector<1x16x4xbf16>, vector<8x16x4xbf16>, vector<1x16x4xbf16> -> vector<10x16x4xbf16>
    %cst_12 = arith.constant 0.000000e+00 : bf16
    %13 = vector.broadcast %cst_12 : bf16 to vector<10x1x4xbf16>
    %14 = tpu.concatenate %13, %12, %13 in 1 : vector<10x1x4xbf16>, vector<10x16x4xbf16>, vector<10x1x4xbf16> -> vector<10x18x4xbf16>
    %15 = vector.extract_strided_slice %14 {offsets = [0, 0, 0], sizes = [8, 16, 4], strides = [1, 1, 1]} : vector<10x18x4xbf16> to vector<8x16x4xbf16>
    %16 = vector.extract_strided_slice %14 {offsets = [0, 1, 0], sizes = [8, 16, 4], strides = [1, 1, 1]} : vector<10x18x4xbf16> to vector<8x16x4xbf16>
    %17 = vector.extract_strided_slice %14 {offsets = [0, 2, 0], sizes = [8, 16, 4], strides = [1, 1, 1]} : vector<10x18x4xbf16> to vector<8x16x4xbf16>
    %18 = vector.extract_strided_slice %14 {offsets = [1, 0, 0], sizes = [8, 16, 4], strides = [1, 1, 1]} : vector<10x18x4xbf16> to vector<8x16x4xbf16>
    %19 = vector.extract_strided_slice %14 {offsets = [1, 1, 0], sizes = [8, 16, 4], strides = [1, 1, 1]} : vector<10x18x4xbf16> to vector<8x16x4xbf16>
    %20 = vector.extract_strided_slice %14 {offsets = [1, 2, 0], sizes = [8, 16, 4], strides = [1, 1, 1]} : vector<10x18x4xbf16> to vector<8x16x4xbf16>
    %21 = vector.extract_strided_slice %14 {offsets = [2, 0, 0], sizes = [8, 16, 4], strides = [1, 1, 1]} : vector<10x18x4xbf16> to vector<8x16x4xbf16>
    %22 = vector.extract_strided_slice %14 {offsets = [2, 1, 0], sizes = [8, 16, 4], strides = [1, 1, 1]} : vector<10x18x4xbf16> to vector<8x16x4xbf16>
    %23 = vector.extract_strided_slice %14 {offsets = [2, 2, 0], sizes = [8, 16, 4], strides = [1, 1, 1]} : vector<10x18x4xbf16> to vector<8x16x4xbf16>
    %24 = tpu.concatenate %15, %16, %17, %18, %19, %20, %21, %22, %23 in 2 : vector<8x16x4xbf16>, vector<8x16x4xbf16>, vector<8x16x4xbf16>, vector<8x16x4xbf16>, vector<8x16x4xbf16>, vector<8x16x4xbf16>, vector<8x16x4xbf16>, vector<8x16x4xbf16>, vector<8x16x4xbf16> -> vector<8x16x36xbf16>
    %25 = vector.shape_cast %24 : vector<8x16x36xbf16> to vector<128x36xbf16>
    %c0_13 = arith.constant 0 : index
    %c0_14 = arith.constant 0 : index
    %26 = vector.load %arg5[%c0_13, %c0_14] : memref<36x8xbf16, #tpu.memory_space<vmem>>, vector<36x8xbf16>
    %cst_15 = arith.constant dense<0.000000e+00> : vector<128x8xf32>
    %27 = tpu.matmul %25, %26, %cst_15 {dimension_numbers = #tpu.dot_dimension_numbers<[1], [0], [0], [1], [0, 0, 1, 1], [], []>} : vector<128x36xbf16>, vector<36x8xbf16>, vector<128x8xf32> -> vector<128x8xf32>
    %28 = vector.shape_cast %27 : vector<128x8xf32> to vector<8x16x8xf32>
    %29 = arith.truncf %28 : vector<8x16x8xf32> to vector<8x16x8xbf16>
    %c0_16 = arith.constant 0 : index
    %c0_17 = arith.constant 0 : index
    %c0_18 = arith.constant 0 : index
    %c0_19 = arith.constant 0 : index
    %30 = vector.load %arg6[%c0_16, %c0_17, %c0_18, %c0_19] : memref<1x8x16x8xbf16, #tpu.memory_space<vmem>>, vector<1x8x16x8xbf16>
    %31 = vector.shape_cast %30 : vector<1x8x16x8xbf16> to vector<8x16x8xbf16>
    %32 = vector.shape_cast %29 : vector<8x16x8xbf16> to vector<1x8x16x8xbf16>
    tpu.vector_store %arg6[%c0_16, %c0_17, %c0_18, %c0_19], %32 {strides = array<i32>} : memref<1x8x16x8xbf16, #tpu.memory_space<vmem>>, vector<1x8x16x8xbf16>,
    %cst_20 = arith.constant dense<0.000000e+00> : vector<8xf32>
    %33 = vector.multi_reduction <add>, %27, %cst_20 [0] : vector<128x8xf32> to vector<8xf32>
    %34 = vector.shape_cast %33 : vector<8xf32> to vector<1x8xf32>
    %35 = arith.mulf %27, %27 : vector<128x8xf32>
    %cst_21 = arith.constant dense<0.000000e+00> : vector<8xf32>
    %36 = vector.multi_reduction <add>, %35, %cst_21 [0] : vector<128x8xf32> to vector<8xf32>
    %37 = vector.shape_cast %36 : vector<8xf32> to vector<1x8xf32>
    %38 = tpu.concatenate %34, %37 in 0 : vector<1x8xf32>, vector<1x8xf32> -> vector<2x8xf32>
    %c0_22 = arith.constant 0 : index
    %c0_23 = arith.constant 0 : index
    %c0_24 = arith.constant 0 : index
    %c0_25 = arith.constant 0 : index
    %39 = vector.load %arg7[%c0_22, %c0_23, %c0_24, %c0_25] : memref<1x1x2x8xf32, #tpu.memory_space<vmem>>, vector<1x1x2x8xf32>
    %40 = vector.shape_cast %39 : vector<1x1x2x8xf32> to vector<2x8xf32>
    %41 = vector.shape_cast %38 : vector<2x8xf32> to vector<1x1x2x8xf32>
    tpu.vector_store %arg7[%c0_22, %c0_23, %c0_24, %c0_25], %41 {strides = array<i32>} : memref<1x1x2x8xf32, #tpu.memory_space<vmem>>, vector<1x1x2x8xf32>,
    return
  }
  func.func @transform_0(%arg0: i32, %arg1: i32) -> (i32, i32, i32, i32) {
    %c0_i32 = arith.constant 0 : i32
    %c0_i32_0 = arith.constant 0 : i32
    %c0_i32_1 = arith.constant 0 : i32
    return %arg0, %arg1, %c0_i32, %c0_i32_0 : i32, i32, i32, i32
  }
  func.func @transform_1(%arg0: i32, %arg1: i32) -> (i32, i32, i32, i32) {
    %c8_i32 = arith.constant 8 : i32
    %0 = arith.muli %arg1, %c8_i32 : i32
    %c1_i32 = arith.constant 1 : i32
    %1 = arith.subi %0, %c1_i32 : i32
    %c0_i32 = arith.constant 0 : i32
    %2 = arith.maxsi %1, %c0_i32 : i32
    %c0_i32_0 = arith.constant 0 : i32
    %c0_i32_1 = arith.constant 0 : i32
    %c0_i32_2 = arith.constant 0 : i32
    return %arg0, %2, %c0_i32_0, %c0_i32_1 : i32, i32, i32, i32
  }
  func.func @transform_2(%arg0: i32, %arg1: i32) -> (i32, i32, i32, i32) {
    %c1_i32 = arith.constant 1 : i32
    %0 = arith.addi %arg1, %c1_i32 : i32
    %c8_i32 = arith.constant 8 : i32
    %1 = arith.muli %0, %c8_i32 : i32
    %c15_i32 = arith.constant 15 : i32
    %2 = arith.minsi %1, %c15_i32 : i32
    %c0_i32 = arith.constant 0 : i32
    %c0_i32_0 = arith.constant 0 : i32
    %c0_i32_1 = arith.constant 0 : i32
    return %arg0, %2, %c0_i32, %c0_i32_0 : i32, i32, i32, i32
  }
  func.func @transform_3(%arg0: i32, %arg1: i32) -> (i32, i32) {
    %c0_i32 = arith.constant 0 : i32
    %c0_i32_0 = arith.constant 0 : i32
    %c0_i32_1 = arith.constant 0 : i32
    return %c0_i32, %c0_i32_0 : i32, i32
  }
  func.func @transform_4(%arg0: i32, %arg1: i32) -> (i32, i32, i32, i32) {
    %c0_i32 = arith.constant 0 : i32
    %c0_i32_0 = arith.constant 0 : i32
    %c0_i32_1 = arith.constant 0 : i32
    return %arg0, %arg1, %c0_i32, %c0_i32_0 : i32, i32, i32, i32
  }
  func.func @transform_5(%arg0: i32, %arg1: i32) -> (i32, i32, i32, i32) {
    %c0_i32 = arith.constant 0 : i32
    %c0_i32_0 = arith.constant 0 : i32
    %c0_i32_1 = arith.constant 0 : i32
    return %arg0, %arg1, %c0_i32, %c0_i32_0 : i32, i32, i32, i32
  }
}

module attributes {stable_mosaic.version = 11 : i64} {
  func.func @_bn_act_kernel(%arg0: i32, %arg1: i32, %arg2: memref<1x8x16x8xbf16, #tpu.memory_space<vmem>>, %arg3: memref<1x8xf32, #tpu.memory_space<vmem>>, %arg4: memref<1x8xf32, #tpu.memory_space<vmem>>, %arg5: memref<1x8x16x8xf32, #tpu.memory_space<vmem>>) attributes {dimension_semantics = [#tpu.dimension_semantics<parallel>, #tpu.dimension_semantics<parallel>], iteration_bounds = array<i64: 2, 2>, scalar_prefetch = 0 : i64, scratch_operands = 0 : i64, tpu.core_type = #tpu.core_type<tc>, window_params = [{transform_indices = @transform_0, window_bounds = array<i64: 1, 8, 16, 8>}, {pipeline_mode = #tpu.pipeline_mode<synchronous>, transform_indices = @transform_1, window_bounds = array<i64: 1, 8>}, {pipeline_mode = #tpu.pipeline_mode<synchronous>, transform_indices = @transform_2, window_bounds = array<i64: 1, 8>}, {transform_indices = @transform_3, window_bounds = array<i64: 1, 8, 16, 8>}]} {
    %c0 = arith.constant 0 : index
    %c0_0 = arith.constant 0 : index
    %c0_1 = arith.constant 0 : index
    %c0_2 = arith.constant 0 : index
    %0 = vector.load %arg2[%c0, %c0_0, %c0_1, %c0_2] : memref<1x8x16x8xbf16, #tpu.memory_space<vmem>>, vector<1x8x16x8xbf16>
    %1 = vector.shape_cast %0 : vector<1x8x16x8xbf16> to vector<8x16x8xbf16>
    %2 = arith.extf %1 : vector<8x16x8xbf16> to vector<8x16x8xf32>
    %c0_3 = arith.constant 0 : index
    %c0_4 = arith.constant 0 : index
    %3 = vector.load %arg3[%c0_3, %c0_4] : memref<1x8xf32, #tpu.memory_space<vmem>>, vector<1x8xf32>
    %4 = vector.shape_cast %3 : vector<1x8xf32> to vector<1x1x8xf32>
    %5 = vector.broadcast %4 : vector<1x1x8xf32> to vector<8x16x8xf32>
    %6 = arith.mulf %2, %5 : vector<8x16x8xf32>
    %c0_5 = arith.constant 0 : index
    %c0_6 = arith.constant 0 : index
    %7 = vector.load %arg4[%c0_5, %c0_6] : memref<1x8xf32, #tpu.memory_space<vmem>>, vector<1x8xf32>
    %8 = vector.shape_cast %7 : vector<1x8xf32> to vector<1x1x8xf32>
    %9 = vector.broadcast %8 : vector<1x1x8xf32> to vector<8x16x8xf32>
    %10 = arith.addf %6, %9 : vector<8x16x8xf32>
    %cst = arith.constant 1.000000e-01 : f32
    %11 = vector.broadcast %cst : f32 to vector<8x16x8xf32>
    %12 = arith.mulf %11, %10 : vector<8x16x8xf32>
    %13 = arith.maximumf %10, %12 : vector<8x16x8xf32>
    %c0_7 = arith.constant 0 : index
    %c0_8 = arith.constant 0 : index
    %c0_9 = arith.constant 0 : index
    %c0_10 = arith.constant 0 : index
    %14 = vector.load %arg5[%c0_7, %c0_8, %c0_9, %c0_10] : memref<1x8x16x8xf32, #tpu.memory_space<vmem>>, vector<1x8x16x8xf32>
    %15 = vector.shape_cast %14 : vector<1x8x16x8xf32> to vector<8x16x8xf32>
    %16 = vector.shape_cast %13 : vector<8x16x8xf32> to vector<1x8x16x8xf32>
    tpu.vector_store %arg5[%c0_7, %c0_8, %c0_9, %c0_10], %16 {strides = array<i32>} : memref<1x8x16x8xf32, #tpu.memory_space<vmem>>, vector<1x8x16x8xf32>,
    return
  }
  func.func @transform_0(%arg0: i32, %arg1: i32) -> (i32, i32, i32, i32) {
    %c0_i32 = arith.constant 0 : i32
    %c0_i32_0 = arith.constant 0 : i32
    %c0_i32_1 = arith.constant 0 : i32
    return %arg0, %arg1, %c0_i32, %c0_i32_0 : i32, i32, i32, i32
  }
  func.func @transform_1(%arg0: i32, %arg1: i32) -> (i32, i32) {
    %c0_i32 = arith.constant 0 : i32
    %c0_i32_0 = arith.constant 0 : i32
    %c0_i32_1 = arith.constant 0 : i32
    return %c0_i32, %c0_i32_0 : i32, i32
  }
  func.func @transform_2(%arg0: i32, %arg1: i32) -> (i32, i32) {
    %c0_i32 = arith.constant 0 : i32
    %c0_i32_0 = arith.constant 0 : i32
    %c0_i32_1 = arith.constant 0 : i32
    return %c0_i32, %c0_i32_0 : i32, i32
  }
  func.func @transform_3(%arg0: i32, %arg1: i32) -> (i32, i32, i32, i32) {
    %c0_i32 = arith.constant 0 : i32
    %c0_i32_0 = arith.constant 0 : i32
    %c0_i32_1 = arith.constant 0 : i32
    return %arg0, %arg1, %c0_i32, %c0_i32_0 : i32, i32, i32, i32
  }
}

module attributes {stable_mosaic.version = 11 : i64} {
  func.func @_conv_stats_kernel(%arg0: i32, %arg1: i32, %arg2: memref<1x8x16x8xbf16, #tpu.memory_space<vmem>>, %arg3: memref<1x1x16x8xbf16, #tpu.memory_space<vmem>>, %arg4: memref<1x1x16x8xbf16, #tpu.memory_space<vmem>>, %arg5: memref<72x8xbf16, #tpu.memory_space<vmem>>, %arg6: memref<1x8xf32, #tpu.memory_space<vmem>>, %arg7: memref<1x8xf32, #tpu.memory_space<vmem>>, %arg8: memref<1x8x16x8xbf16, #tpu.memory_space<vmem>>, %arg9: memref<1x1x2x8xf32, #tpu.memory_space<vmem>>) attributes {dimension_semantics = [#tpu.dimension_semantics<parallel>, #tpu.dimension_semantics<parallel>], iteration_bounds = array<i64: 2, 2>, scalar_prefetch = 0 : i64, scratch_operands = 0 : i64, tpu.core_type = #tpu.core_type<tc>, window_params = [{transform_indices = @transform_0, window_bounds = array<i64: 1, 8, 16, 8>}, {transform_indices = @transform_1, window_bounds = array<i64: 1, 1, 16, 8>}, {transform_indices = @transform_2, window_bounds = array<i64: 1, 1, 16, 8>}, {pipeline_mode = #tpu.pipeline_mode<synchronous>, transform_indices = @transform_3, window_bounds = array<i64: 72, 8>}, {pipeline_mode = #tpu.pipeline_mode<synchronous>, transform_indices = @transform_4, window_bounds = array<i64: 1, 8>}, {pipeline_mode = #tpu.pipeline_mode<synchronous>, transform_indices = @transform_5, window_bounds = array<i64: 1, 8>}, {transform_indices = @transform_6, window_bounds = array<i64: 1, 8, 16, 8>}, {transform_indices = @transform_7, window_bounds = array<i64: 1, 1, 2, 8>}]} {
    %c0 = arith.constant 0 : index
    %c0_0 = arith.constant 0 : index
    %c0_1 = arith.constant 0 : index
    %c0_2 = arith.constant 0 : index
    %0 = vector.load %arg2[%c0, %c0_0, %c0_1, %c0_2] : memref<1x8x16x8xbf16, #tpu.memory_space<vmem>>, vector<1x8x16x8xbf16>
    %1 = vector.shape_cast %0 : vector<1x8x16x8xbf16> to vector<8x16x8xbf16>
    %2 = arith.extf %1 : vector<8x16x8xbf16> to vector<8x16x8xf32>
    %c0_3 = arith.constant 0 : index
    %c0_4 = arith.constant 0 : index
    %3 = vector.load %arg6[%c0_3, %c0_4] : memref<1x8xf32, #tpu.memory_space<vmem>>, vector<1x8xf32>
    %4 = vector.shape_cast %3 : vector<1x8xf32> to vector<1x1x8xf32>
    %5 = vector.broadcast %4 : vector<1x1x8xf32> to vector<8x16x8xf32>
    %6 = arith.mulf %2, %5 : vector<8x16x8xf32>
    %c0_5 = arith.constant 0 : index
    %c0_6 = arith.constant 0 : index
    %7 = vector.load %arg7[%c0_5, %c0_6] : memref<1x8xf32, #tpu.memory_space<vmem>>, vector<1x8xf32>
    %8 = vector.shape_cast %7 : vector<1x8xf32> to vector<1x1x8xf32>
    %9 = vector.broadcast %8 : vector<1x1x8xf32> to vector<8x16x8xf32>
    %10 = arith.addf %6, %9 : vector<8x16x8xf32>
    %cst = arith.constant 1.000000e-01 : f32
    %11 = vector.broadcast %cst : f32 to vector<8x16x8xf32>
    %12 = arith.mulf %11, %10 : vector<8x16x8xf32>
    %13 = arith.maximumf %10, %12 : vector<8x16x8xf32>
    %14 = arith.truncf %13 : vector<8x16x8xf32> to vector<8x16x8xbf16>
    %c0_7 = arith.constant 0 : index
    %c0_8 = arith.constant 0 : index
    %c0_9 = arith.constant 0 : index
    %c0_10 = arith.constant 0 : index
    %15 = vector.load %arg3[%c0_7, %c0_8, %c0_9, %c0_10] : memref<1x1x16x8xbf16, #tpu.memory_space<vmem>>, vector<1x1x16x8xbf16>
    %16 = vector.shape_cast %15 : vector<1x1x16x8xbf16> to vector<1x16x8xbf16>
    %17 = arith.extf %16 : vector<1x16x8xbf16> to vector<1x16x8xf32>
    %c0_11 = arith.constant 0 : index
    %c0_12 = arith.constant 0 : index
    %18 = vector.load %arg6[%c0_11, %c0_12] : memref<1x8xf32, #tpu.memory_space<vmem>>, vector<1x8xf32>
    %19 = vector.shape_cast %18 : vector<1x8xf32> to vector<1x1x8xf32>
    %20 = vector.broadcast %19 : vector<1x1x8xf32> to vector<1x16x8xf32>
    %21 = arith.mulf %17, %20 : vector<1x16x8xf32>
    %c0_13 = arith.constant 0 : index
    %c0_14 = arith.constant 0 : index
    %22 = vector.load %arg7[%c0_13, %c0_14] : memref<1x8xf32, #tpu.memory_space<vmem>>, vector<1x8xf32>
    %23 = vector.shape_cast %22 : vector<1x8xf32> to vector<1x1x8xf32>
    %24 = vector.broadcast %23 : vector<1x1x8xf32> to vector<1x16x8xf32>
    %25 = arith.addf %21, %24 : vector<1x16x8xf32>
    %cst_15 = arith.constant 1.000000e-01 : f32
    %26 = vector.broadcast %cst_15 : f32 to vector<1x16x8xf32>
    %27 = arith.mulf %26, %25 : vector<1x16x8xf32>
    %28 = arith.maximumf %25, %27 : vector<1x16x8xf32>
    %29 = arith.truncf %28 : vector<1x16x8xf32> to vector<1x16x8xbf16>
    %c0_16 = arith.constant 0 : index
    %c0_17 = arith.constant 0 : index
    %c0_18 = arith.constant 0 : index
    %c0_19 = arith.constant 0 : index
    %30 = vector.load %arg4[%c0_16, %c0_17, %c0_18, %c0_19] : memref<1x1x16x8xbf16, #tpu.memory_space<vmem>>, vector<1x1x16x8xbf16>
    %31 = vector.shape_cast %30 : vector<1x1x16x8xbf16> to vector<1x16x8xbf16>
    %32 = arith.extf %31 : vector<1x16x8xbf16> to vector<1x16x8xf32>
    %c0_20 = arith.constant 0 : index
    %c0_21 = arith.constant 0 : index
    %33 = vector.load %arg6[%c0_20, %c0_21] : memref<1x8xf32, #tpu.memory_space<vmem>>, vector<1x8xf32>
    %34 = vector.shape_cast %33 : vector<1x8xf32> to vector<1x1x8xf32>
    %35 = vector.broadcast %34 : vector<1x1x8xf32> to vector<1x16x8xf32>
    %36 = arith.mulf %32, %35 : vector<1x16x8xf32>
    %c0_22 = arith.constant 0 : index
    %c0_23 = arith.constant 0 : index
    %37 = vector.load %arg7[%c0_22, %c0_23] : memref<1x8xf32, #tpu.memory_space<vmem>>, vector<1x8xf32>
    %38 = vector.shape_cast %37 : vector<1x8xf32> to vector<1x1x8xf32>
    %39 = vector.broadcast %38 : vector<1x1x8xf32> to vector<1x16x8xf32>
    %40 = arith.addf %36, %39 : vector<1x16x8xf32>
    %cst_24 = arith.constant 1.000000e-01 : f32
    %41 = vector.broadcast %cst_24 : f32 to vector<1x16x8xf32>
    %42 = arith.mulf %41, %40 : vector<1x16x8xf32>
    %43 = arith.maximumf %40, %42 : vector<1x16x8xf32>
    %44 = arith.truncf %43 : vector<1x16x8xf32> to vector<1x16x8xbf16>
    %c0_i32 = arith.constant 0 : i32
    %45 = arith.cmpi sgt, %arg1, %c0_i32 : i32
    %cst_25 = arith.constant 0.000000e+00 : bf16
    %46 = vector.broadcast %cst_25 : bf16 to vector<1x16x8xbf16>
    %47 = arith.select %45, %29, %46 : vector<1x16x8xbf16>
    %c1_i32 = arith.constant 1 : i32
    %48 = arith.cmpi slt, %arg1, %c1_i32 : i32
    %cst_26 = arith.constant 0.000000e+00 : bf16
    %49 = vector.broadcast %cst_26 : bf16 to vector<1x16x8xbf16>
    %50 = arith.select %48, %44, %49 : vector<1x16x8xbf16>
    %51 = tpu.concatenate %47, %14, %50 in 0 : vector<1x16x8xbf16>, vector<8x16x8xbf16>, vector<1x16x8xbf16> -> vector<10x16x8xbf16>
    %cst_27 = arith.constant 0.000000e+00 : bf16
    %52 = vector.broadcast %cst_27 : bf16 to vector<10x1x8xbf16>
    %53 = tpu.concatenate %52, %51, %52 in 1 : vector<10x1x8xbf16>, vector<10x16x8xbf16>, vector<10x1x8xbf16> -> vector<10x18x8xbf16>
    %54 = vector.extract_strided_slice %53 {offsets = [0, 0, 0], sizes = [8, 16, 8], strides = [1, 1, 1]} : vector<10x18x8xbf16> to vector<8x16x8xbf16>
    %55 = vector.extract_strided_slice %53 {offsets = [0, 1, 0], sizes = [8, 16, 8], strides = [1, 1, 1]} : vector<10x18x8xbf16> to vector<8x16x8xbf16>
    %56 = vector.extract_strided_slice %53 {offsets = [0, 2, 0], sizes = [8, 16, 8], strides = [1, 1, 1]} : vector<10x18x8xbf16> to vector<8x16x8xbf16>
    %57 = vector.extract_strided_slice %53 {offsets = [1, 0, 0], sizes = [8, 16, 8], strides = [1, 1, 1]} : vector<10x18x8xbf16> to vector<8x16x8xbf16>
    %58 = vector.extract_strided_slice %53 {offsets = [1, 1, 0], sizes = [8, 16, 8], strides = [1, 1, 1]} : vector<10x18x8xbf16> to vector<8x16x8xbf16>
    %59 = vector.extract_strided_slice %53 {offsets = [1, 2, 0], sizes = [8, 16, 8], strides = [1, 1, 1]} : vector<10x18x8xbf16> to vector<8x16x8xbf16>
    %60 = vector.extract_strided_slice %53 {offsets = [2, 0, 0], sizes = [8, 16, 8], strides = [1, 1, 1]} : vector<10x18x8xbf16> to vector<8x16x8xbf16>
    %61 = vector.extract_strided_slice %53 {offsets = [2, 1, 0], sizes = [8, 16, 8], strides = [1, 1, 1]} : vector<10x18x8xbf16> to vector<8x16x8xbf16>
    %62 = vector.extract_strided_slice %53 {offsets = [2, 2, 0], sizes = [8, 16, 8], strides = [1, 1, 1]} : vector<10x18x8xbf16> to vector<8x16x8xbf16>
    %63 = tpu.concatenate %54, %55, %56, %57, %58, %59, %60, %61, %62 in 2 : vector<8x16x8xbf16>, vector<8x16x8xbf16>, vector<8x16x8xbf16>, vector<8x16x8xbf16>, vector<8x16x8xbf16>, vector<8x16x8xbf16>, vector<8x16x8xbf16>, vector<8x16x8xbf16>, vector<8x16x8xbf16> -> vector<8x16x72xbf16>
    %64 = vector.shape_cast %63 : vector<8x16x72xbf16> to vector<128x72xbf16>
    %c0_28 = arith.constant 0 : index
    %c0_29 = arith.constant 0 : index
    %65 = vector.load %arg5[%c0_28, %c0_29] : memref<72x8xbf16, #tpu.memory_space<vmem>>, vector<72x8xbf16>
    %cst_30 = arith.constant dense<0.000000e+00> : vector<128x8xf32>
    %66 = tpu.matmul %64, %65, %cst_30 {dimension_numbers = #tpu.dot_dimension_numbers<[1], [0], [0], [1], [0, 0, 1, 1], [], []>} : vector<128x72xbf16>, vector<72x8xbf16>, vector<128x8xf32> -> vector<128x8xf32>
    %67 = vector.shape_cast %66 : vector<128x8xf32> to vector<8x16x8xf32>
    %68 = arith.truncf %67 : vector<8x16x8xf32> to vector<8x16x8xbf16>
    %c0_31 = arith.constant 0 : index
    %c0_32 = arith.constant 0 : index
    %c0_33 = arith.constant 0 : index
    %c0_34 = arith.constant 0 : index
    %69 = vector.load %arg8[%c0_31, %c0_32, %c0_33, %c0_34] : memref<1x8x16x8xbf16, #tpu.memory_space<vmem>>, vector<1x8x16x8xbf16>
    %70 = vector.shape_cast %69 : vector<1x8x16x8xbf16> to vector<8x16x8xbf16>
    %71 = vector.shape_cast %68 : vector<8x16x8xbf16> to vector<1x8x16x8xbf16>
    tpu.vector_store %arg8[%c0_31, %c0_32, %c0_33, %c0_34], %71 {strides = array<i32>} : memref<1x8x16x8xbf16, #tpu.memory_space<vmem>>, vector<1x8x16x8xbf16>,
    %cst_35 = arith.constant dense<0.000000e+00> : vector<8xf32>
    %72 = vector.multi_reduction <add>, %66, %cst_35 [0] : vector<128x8xf32> to vector<8xf32>
    %73 = vector.shape_cast %72 : vector<8xf32> to vector<1x8xf32>
    %74 = arith.mulf %66, %66 : vector<128x8xf32>
    %cst_36 = arith.constant dense<0.000000e+00> : vector<8xf32>
    %75 = vector.multi_reduction <add>, %74, %cst_36 [0] : vector<128x8xf32> to vector<8xf32>
    %76 = vector.shape_cast %75 : vector<8xf32> to vector<1x8xf32>
    %77 = tpu.concatenate %73, %76 in 0 : vector<1x8xf32>, vector<1x8xf32> -> vector<2x8xf32>
    %c0_37 = arith.constant 0 : index
    %c0_38 = arith.constant 0 : index
    %c0_39 = arith.constant 0 : index
    %c0_40 = arith.constant 0 : index
    %78 = vector.load %arg9[%c0_37, %c0_38, %c0_39, %c0_40] : memref<1x1x2x8xf32, #tpu.memory_space<vmem>>, vector<1x1x2x8xf32>
    %79 = vector.shape_cast %78 : vector<1x1x2x8xf32> to vector<2x8xf32>
    %80 = vector.shape_cast %77 : vector<2x8xf32> to vector<1x1x2x8xf32>
    tpu.vector_store %arg9[%c0_37, %c0_38, %c0_39, %c0_40], %80 {strides = array<i32>} : memref<1x1x2x8xf32, #tpu.memory_space<vmem>>, vector<1x1x2x8xf32>,
    return
  }
  func.func @transform_0(%arg0: i32, %arg1: i32) -> (i32, i32, i32, i32) {
    %c0_i32 = arith.constant 0 : i32
    %c0_i32_0 = arith.constant 0 : i32
    %c0_i32_1 = arith.constant 0 : i32
    return %arg0, %arg1, %c0_i32, %c0_i32_0 : i32, i32, i32, i32
  }
  func.func @transform_1(%arg0: i32, %arg1: i32) -> (i32, i32, i32, i32) {
    %c8_i32 = arith.constant 8 : i32
    %0 = arith.muli %arg1, %c8_i32 : i32
    %c1_i32 = arith.constant 1 : i32
    %1 = arith.subi %0, %c1_i32 : i32
    %c0_i32 = arith.constant 0 : i32
    %2 = arith.maxsi %1, %c0_i32 : i32
    %c0_i32_0 = arith.constant 0 : i32
    %c0_i32_1 = arith.constant 0 : i32
    %c0_i32_2 = arith.constant 0 : i32
    return %arg0, %2, %c0_i32_0, %c0_i32_1 : i32, i32, i32, i32
  }
  func.func @transform_2(%arg0: i32, %arg1: i32) -> (i32, i32, i32, i32) {
    %c1_i32 = arith.constant 1 : i32
    %0 = arith.addi %arg1, %c1_i32 : i32
    %c8_i32 = arith.constant 8 : i32
    %1 = arith.muli %0, %c8_i32 : i32
    %c15_i32 = arith.constant 15 : i32
    %2 = arith.minsi %1, %c15_i32 : i32
    %c0_i32 = arith.constant 0 : i32
    %c0_i32_0 = arith.constant 0 : i32
    %c0_i32_1 = arith.constant 0 : i32
    return %arg0, %2, %c0_i32, %c0_i32_0 : i32, i32, i32, i32
  }
  func.func @transform_3(%arg0: i32, %arg1: i32) -> (i32, i32) {
    %c0_i32 = arith.constant 0 : i32
    %c0_i32_0 = arith.constant 0 : i32
    %c0_i32_1 = arith.constant 0 : i32
    return %c0_i32, %c0_i32_0 : i32, i32
  }
  func.func @transform_4(%arg0: i32, %arg1: i32) -> (i32, i32) {
    %c0_i32 = arith.constant 0 : i32
    %c0_i32_0 = arith.constant 0 : i32
    %c0_i32_1 = arith.constant 0 : i32
    return %c0_i32, %c0_i32_0 : i32, i32
  }
  func.func @transform_5(%arg0: i32, %arg1: i32) -> (i32, i32) {
    %c0_i32 = arith.constant 0 : i32
    %c0_i32_0 = arith.constant 0 : i32
    %c0_i32_1 = arith.constant 0 : i32
    return %c0_i32, %c0_i32_0 : i32, i32
  }
  func.func @transform_6(%arg0: i32, %arg1: i32) -> (i32, i32, i32, i32) {
    %c0_i32 = arith.constant 0 : i32
    %c0_i32_0 = arith.constant 0 : i32
    %c0_i32_1 = arith.constant 0 : i32
    return %arg0, %arg1, %c0_i32, %c0_i32_0 : i32, i32, i32, i32
  }
  func.func @transform_7(%arg0: i32, %arg1: i32) -> (i32, i32, i32, i32) {
    %c0_i32 = arith.constant 0 : i32
    %c0_i32_0 = arith.constant 0 : i32
    %c0_i32_1 = arith.constant 0 : i32
    return %arg0, %arg1, %c0_i32, %c0_i32_0 : i32, i32, i32, i32
  }
}

</mosaic_0001>

<bundles_post_ra>
// kernel: conv_module_forward.5
= control target key start
LH: loop header
LB: loop body
LE: loop exit
PB: predicated region body
PF: predicated region fallthrough
CT: control target
= control target key end

     0   :  { %s591_s12 = smov 0   ;;  %s593_s13 = smov 0   ;;  %s732_s0 = inlined_call_operand.vmem [shape: bf16[2,16,16,8], index: 0, kind: input, shape index: {}]   ;;  %s733_s1 = inlined_call_operand.vmem [shape: f32[1,8], index: 1, kind: input, shape index: {}]   ;;  %s734_s2 = inlined_call_operand.vmem [shape: f32[1,8], index: 2, kind: input, shape index: {}]   ;;  %s735_s3 = inlined_call_operand.vmem [shape: f32[2,16,16,8], index: 3, kind: output, shape index: {}]  }
   0x1   :  { %s595_s14 = smov 0   ;;  %s597_s15 = smov 0  }
   0x2   :  { %s599_s16 = smov 0  }
   0x3 LB: > { %s22_s17 = sadd.s32 1, %s561_s14  ;;  %s25_s18 = sadd.s32 1, %s565_s15  ;;  %s569_s16 = sphi %s599_s16, %s13_s16   ;;  %s565_s15 = sphi %s597_s15, %s739_s15   ;;  %s561_s14 = sphi %s595_s14, %s738_s14   ;;  %s557_s13 = sphi %s593_s13, %s737_s13   ;;  %s553_s12 = sphi %s591_s12, %s736_s12  }
   0x4   : > { %p23_p0 = scmp.ge.s32.totalorder %s22_s17, 2  ;;  %p439_p1 = scmp.ge.s32.totalorder %s569_s16, 1 }
   0x5   : > { %p159_p2 = scmp.lt.s32.totalorder %s569_s16, 5 }
   0x6   : > { %s741_s17 = smov (%p23_p0, %s22_s17), 0  ;;  %s743_s18 = smov (!%p23_p0, %s25_s18), %s565_s15 }
   0x7   : > { %p160_p3 = pnand %p439_p1, %p159_p2  ;;  %p27_p4 = scmp.ge.s32.totalorder %s743_s18, 2 }
   0x8   : > { %s440_s19 = sshll.u32 (!%p160_p3), %s553_s12, 3  ;;  %p194_p5 = scmp.lt.s32.totalorder (!%p160_p3), %s557_s13, 1 }
   0x9   : > { %s745_s18 = smov (%p27_p4, %s743_s18), 0  ;;  %163 = sbr.rel (%p160_p3) target bundleno = 46 (0x2e), region = 32 }
   0xa   : > { %p196_p6 = scmp.lt.s32.totalorder (!%p160_p3), %s440_s19, 15 }
   0xe   : > { %s747_s13 = smov (!%p194_p5, %s557_s13), 1  ;;  %s749_s19 = smov (!%p196_p6, %s440_s19), 15  ;;  %v632_v0 = vld [vmem:[%s733_s1] ss:$0 sm:$0xff]  ;;  %vm319_vm0 = vcmask 64512  }
   0xf   : > { %s442_s20 = sshll.u32 %s747_s13, 5  ;;  %s441_s21 = sshll.u32 %s749_s19, 1  ;;  %v640_v5 = vld [vmem:[%s734_s2] ss:$0 sm:$0xff] }
  0x10   : > { %s621_s22 = sadd.s32 %s442_s20, %s441_s21 }
  0x11   : > { %s443_s23 = sshll.u32 %s621_s22, 2  ;;  %s447_s4 = sshll.u32 %s621_s22, 3 }
  0x12   : > { %s627_s26 = scalar_lea.vmem %s732_s0, %s443_s23  ;;  %s665_s7 = scalar_lea.vmem %s735_s3, %s447_s4 }
  0x13   : > { %v451_v1 = vld [vmem:[%s627_s26] sm:$0xff]   ;;  %v482_v2 = vld [vmem:[%s627_s26 + $0x8] sm:$0xff]   ;;  %v483_v3 = vld [vmem:[%s627_s26 + $0x10] sm:$0xff]  }
  0x14   : > { %v452_v4 = vunpack.c.l.bf16 %v451_v1  ;;  %v453_v6 = vunpack.c.h.bf16 %v451_v1  ;;  %v456_v7 = vunpack.c.l.bf16 %v482_v2  ;;  %v457_v8 = vunpack.c.h.bf16 %v482_v2  ;;  %v484_v9 = vld [vmem:[%s627_s26 + $0x18] sm:$0xff]   ;;  %v485_v22 = vld [vmem:[%s627_s26 + $0x20] sm:$0xff]   ;;  %v486_v31 = vld [vmem:[%s627_s26 + $0x28] sm:$0xff]  }
  0x15   : > { %v460_v10 = vunpack.c.l.bf16 %v483_v3  ;;  %v461_v11 = vunpack.c.h.bf16 %v483_v3  ;;  %v464_v12 = vunpack.c.l.bf16 %v484_v9  ;;  %v465_v13 = vunpack.c.h.bf16 %v484_v9  ;;  %v487_v44 = vld [vmem:[%s627_s26 + $0x30] sm:$0xff]   ;;  %v488_v49 = vld [vmem:[%s627_s26 + $0x38] sm:$0xff]  }
  0x16   : > { %v251_v14 = vmul.f32 %v632_v0, %v452_v4  ;;  %v252_v15 = vmul.f32 %v632_v0, %v453_v6  ;;  %v253_v16 = vmul.f32 %v632_v0, %v456_v7  ;;  %v254_v17 = vmul.f32 %v632_v0, %v457_v8 }
  0x17   : > { %v255_v18 = vmul.f32 %v632_v0, %v460_v10  ;;  %v256_v19 = vmul.f32 %v632_v0, %v461_v11  ;;  %v257_v20 = vmul.f32 %v632_v0, %v464_v12  ;;  %v258_v21 = vmul.f32 %v632_v0, %v465_v13 }
  0x18   : > { %v271_v23 = vadd.f32 %v640_v5, %v251_v14  ;;  %v272_v24 = vadd.f32 %v640_v5, %v252_v15  ;;  %v273_v25 = vadd.f32 %v640_v5, %v253_v16  ;;  %v274_v26 = vadd.f32 %v640_v5, %v254_v17 }
  0x19   : > { %v275_v27 = vadd.f32 %v640_v5, %v255_v18  ;;  %v276_v28 = vadd.f32 %v640_v5, %v256_v19  ;;  %v277_v29 = vadd.f32 %v640_v5, %v257_v20  ;;  %v278_v30 = vadd.f32 %v640_v5, %v258_v21 }
  0x1a   : > { %v287_v32 = vmul.f32 0.1, %v271_v23  ;;  %v288_v33 = vmul.f32 0.1, %v272_v24  ;;  %v289_v34 = vmul.f32 0.1, %v273_v25  ;;  %v468_v35 = vunpack.c.l.bf16 %v485_v22 }
  0x1b   : > { %v290_v36 = vmul.f32 0.1, %v274_v26  ;;  %v291_v37 = vmul.f32 0.1, %v275_v27  ;;  %v292_v38 = vmul.f32 0.1, %v276_v28  ;;  %v469_v39 = vunpack.c.h.bf16 %v485_v22 }
  0x1c   : > { %v303_v40 = vmax.f32 %v271_v23, %v287_v32  ;;  %v304_v41 = vmax.f32 %v272_v24, %v288_v33  ;;  %v305_v42 = vmax.f32 %v273_v25, %v289_v34  ;;  %v293_v43 = vmul.f32 0.1, %v277_v29 }
  0x1d   : > { %v306_v45 = vmax.f32 %v274_v26, %v290_v36  ;;  %v307_v46 = vmax.f32 %v275_v27, %v291_v37  ;;  %v308_v47 = vmax.f32 %v276_v28, %v292_v38  ;;  %v294_v48 = vmul.f32 0.1, %v278_v30 }
  0x1e   : > { %320 = vst.msk [vmem:[%s665_s7] sm:$0xff] %vm319_vm0, %v303_v40  ;;  %v309_v50 = vmax.f32 %v277_v29, %v293_v43  ;;  %v259_v51 = vmul.f32 %v632_v0, %v468_v35  ;;  %v260_v52 = vmul.f32 %v632_v0, %v469_v39  ;;  %v472_v53 = vunpack.c.l.bf16 %v486_v31 }
  0x1f   : > { %321 = vst.msk [vmem:[%s665_s7 + $0x8] sm:$0xff] %vm319_vm0, %v304_v41  ;;  %v310_v54 = vmax.f32 %v278_v30, %v294_v48  ;;  %v473_v55 = vunpack.c.h.bf16 %v486_v31  ;;  %v476_v56 = vunpack.c.l.bf16 %v487_v44  ;;  %v477_v57 = vunpack.c.h.bf16 %v487_v44 }
  0x20   : > { %322 = vst.msk [vmem:[%s665_s7 + $0x10] sm:$0xff] %vm319_vm0, %v305_v42  ;;  %v279_v58 = vadd.f32 %v640_v5, %v259_v51  ;;  %v280_v59 = vadd.f32 %v640_v5, %v260_v52  ;;  %v261_v60 = vmul.f32 %v632_v0, %v472_v53  ;;  %v480_v61 = vunpack.c.l.bf16 %v488_v49 }
  0x21   : > { %323 = vst.msk [vmem:[%s665_s7 + $0x18] sm:$0xff] %vm319_vm0, %v306_v45  ;;  %v262_v62 = vmul.f32 %v632_v0, %v473_v55  ;;  %v263_v63 = vmul.f32 %v632_v0, %v476_v56  ;;  %v264_v1 = vmul.f32 %v632_v0, %v477_v57  ;;  %v481_v2 = vunpack.c.h.bf16 %v488_v49 }
  0x22   : > { %324 = vst.msk [vmem:[%s665_s7 + $0x20] sm:$0xff] %vm319_vm0, %v307_v46  ;;  %v295_v3 = vmul.f32 0.1, %v279_v58  ;;  %v296_v4 = vmul.f32 0.1, %v280_v59  ;;  %v281_v6 = vadd.f32 %v640_v5, %v261_v60  ;;  %v265_v7 = vmul.f32 %v632_v0, %v480_v61 }
  0x23   : > { %325 = vst.msk [vmem:[%s665_s7 + $0x28] sm:$0xff] %vm319_vm0, %v308_v47  ;;  %v282_v8 = vadd.f32 %v640_v5, %v262_v62  ;;  %v283_v9 = vadd.f32 %v640_v5, %v263_v63  ;;  %v284_v10 = vadd.f32 %v640_v5, %v264_v1  ;;  %v266_v11 = vmul.f32 %v632_v0, %v481_v2 }
  0x24   : > { %326 = vst.msk [vmem:[%s665_s7 + $0x30] sm:$0xff] %vm319_vm0, %v309_v50  ;;  %v311_v12 = vmax.f32 %v279_v58, %v295_v3  ;;  %v312_v13 = vmax.f32 %v280_v59, %v296_v4  ;;  %v297_v14 = vmul.f32 0.1, %v281_v6  ;;  %v285_v15 = vadd.f32 %v640_v5, %v265_v7 }
  0x25   : > { %327 = vst.msk [vmem:[%s665_s7 + $0x38] sm:$0xff] %vm319_vm0, %v310_v54  ;;  %v298_v16 = vmul.f32 0.1, %v282_v8  ;;  %v299_v17 = vmul.f32 0.1, %v283_v9  ;;  %v286_v18 = vadd.f32 %v640_v5, %v266_v11 }
  0x26   : > { %328 = vst.msk [vmem:[%s665_s7 + $0x40] sm:$0xff] %vm319_vm0, %v311_v12  ;;  %v313_v0 = vmax.f32 %v281_v6, %v297_v14  ;;  %v300_v19 = vmul.f32 0.1, %v284_v10  ;;  %v301_v20 = vmul.f32 0.1, %v285_v15 }
  0x27   : > { %329 = vst.msk [vmem:[%s665_s7 + $0x48] sm:$0xff] %vm319_vm0, %v312_v13  ;;  %v314_v21 = vmax.f32 %v282_v8, %v298_v16  ;;  %v315_v22 = vmax.f32 %v283_v9, %v299_v17  ;;  %v302_v23 = vmul.f32 0.1, %v286_v18 }
  0x28   : > { %330 = vst.msk [vmem:[%s665_s7 + $0x50] sm:$0xff] %vm319_vm0, %v313_v0  ;;  %v316_v24 = vmax.f32 %v284_v10, %v300_v19  ;;  %v317_v25 = vmax.f32 %v285_v15, %v301_v20 }
  0x29   : > { %331 = vst.msk [vmem:[%s665_s7 + $0x58] sm:$0xff] %vm319_vm0, %v314_v21  ;;  %v318_v26 = vmax.f32 %v286_v18, %v302_v23 }
  0x2a   : > { %332 = vst.msk [vmem:[%s665_s7 + $0x60] sm:$0xff] %vm319_vm0, %v315_v22 }
  0x2b   : > { %333 = vst.msk [vmem:[%s665_s7 + $0x68] sm:$0xff] %vm319_vm0, %v316_v24 }
  0x2c   : > { %334 = vst.msk [vmem:[%s665_s7 + $0x70] sm:$0xff] %vm319_vm0, %v317_v25 }
  0x2d   : > { %335 = vst.msk [vmem:[%s665_s7 + $0x78] sm:$0xff] %vm319_vm0, %v318_v26 }
  0x2e PF: > { %s13_s16 = sadd.s32 1, %s569_s16   ;;  %s736_s12 = smov %s561_s14 }
  0x2f   : > { %p10_p7 = scmp.ge.s32.totalorder %s13_s16, 6   ;;  %s737_s13 = smov %s565_s15 }
  0x30   : > { %s738_s14 = smov %s741_s17  ;;  %s739_s15 = smov %s745_s18 }
  0x31   :  { %12 = sbr.rel (!%p10_p7) target bundleno = 3 (0x3), region = 62 }

// kernel: conv_module_forward.3
= control target key start
LH: loop header
LB: loop body
LE: loop exit
PB: predicated region body
PF: predicated region fallthrough
CT: control target
= control target key end

     0   :  { %s1692_s18 = smov 0   ;;  %s1694_s19 = smov 0   ;;  %s2267_s0 = inlined_call_operand.vmem [shape: bf16[2,16,16,4], index: 0, kind: input, shape index: {}, may-alias: {0,1,2}]   ;;  %s2268_s1 = inlined_call_operand.vmem [shape: bf16[2,16,16,4], index: 1, kind: input, shape index: {}, may-alias: {0,1,2}]   ;;  %s2269_s2 = inlined_call_operand.vmem [shape: bf16[2,16,16,4], index: 2, kind: input, shape index: {}, may-alias: {0,1,2}]   ;;  %s2270_s3 = inlined_call_operand.vmem [shape: bf16[36,8], index: 3, kind: input, shape index: {}]   ;;  %s2271_s4 = inlined_call_operand.vmem [shape: bf16[2,16,16,8], index: 4, kind: output, shape index: {0}]   ;;  %s2272_s5 = inlined_call_operand.vmem [shape: f32[2,2,2,8], index: 5, kind: output, shape index: {1}]  }
   0x1   :  { %s1696_s20 = smov 0   ;;  %s1698_s21 = smov 0  }
   0x2   :  { %s1700_s22 = smov 0  }
   0x3 LB: > { %s25_s23 = sadd.s32 1, %s1644_s20  ;;  %s28_s24 = sadd.s32 1, %s1648_s21  ;;  %s1652_s22 = sphi %s1700_s22, %s16_s22   ;;  %s1648_s21 = sphi %s1698_s21, %s2279_s21   ;;  %s1644_s20 = sphi %s1696_s20, %s2278_s20   ;;  %s1640_s19 = sphi %s1694_s19, %s2277_s19   ;;  %s1636_s18 = sphi %s1692_s18, %s2276_s18  }
   0x4   : > { %p26_p0 = scmp.ge.s32.totalorder %s25_s23, 2  ;;  %p1461_p1 = scmp.ge.s32.totalorder %s1652_s22, 1 }
   0x5   : > { %p278_p2 = scmp.lt.s32.totalorder %s1652_s22, 5 }
   0x6   : > { %s2281_s23 = smov (%p26_p0, %s25_s23), 0  ;;  %s2283_s24 = smov (!%p26_p0, %s28_s24), %s1648_s21 }
   0x7   : > { %p279_p3 = pnand %p1461_p1, %p278_p2  ;;  %p30_p4 = scmp.ge.s32.totalorder %s2283_s24, 2 }
   0x8   : > { %s1725_s25 = sshll.u32 (!%p279_p3), %s1636_s18, 3  ;;  %p351_p5 = scmp.lt.s32.totalorder (!%p279_p3), %s1640_s19, 1 }
   0x9   : > { %s2285_s24 = smov (%p30_p4, %s2283_s24), 0  ;;  %282 = sbr.rel (%p279_p3) target bundleno = 475 (0x1db), region = 36 }
   0xa   : > { %p353_p6 = scmp.lt.s32.totalorder (!%p279_p3), %s1725_s25, 15  ;;  %s1467_s9 = sadd.s32 (!%p279_p3), 4294967295, %s1725_s25 }
   0xb   : > { %p363_p7 = scmp.gt.s32.totalorder (!%p279_p3), %s1467_s9, 0  ;;  %p1468_p8 = scmp.lt.s32.totalorder (!%p279_p3), %s1467_s9, 15 }
   0xc   : > { %p435_p9 = scmp.gt.s32.totalorder (!%p279_p3), %s1636_s18, 0  ;;  %s1654_s14 = smov (!%p279_p3), 12  }
   0xd   : > { %s1655_s15 = smov (!%p279_p3), 24   ;;  %s1656_s6 = smov (!%p279_p3), 8  }
   0xe   : > { %s2287_s19 = smov (!%p351_p5, %s1640_s19), 1  ;;  %vm587_vm0 = vcmask 1040384   ;;  %vm588_vm1 = vsmask.f32 256  ;;  %vm739_vm3 = vcmask 1046528   ;;  %s1657_s7 = smov 32  }
   0xf   : > { %s354_s26 = scalar_select %p353_p6, %s1725_s25, 15  ;;  %vm1752_vm2 = vmand %vm587_vm0, %vm588_vm1  ;;  %vm610_vm4 = vsmask.f32 7424  ;;  %vm1083_vm6 = vcmask 1041408   ;;  %vm910_vm8 = vcmask 31744   ;;  %vm927_vm9 = vcmask 64512  }
  0x10   : > { %s1732_s27 = sshll.u32 %s2287_s19, 5  ;;  %s1661_s17 = smov 4   ;;  %vm944_vm10 = vcmask 97280   ;;  %vm978_vm11 = vcmask 162816   ;;  %vm961_vm12 = vcmask 130048   ;;  %vm995_vm13 = vcmask 195584  }
  0x11   : > { %s1463_s28 = sshll.u32 %s354_s26, 1  ;;  %p408_p11 = scmp.lt.s32.totalorder %s1636_s18, 1  ;;  %vm1012_vm14 = vcmask 228352   ;;  %vm1029_vm15 = vcmask 261120   ;;  %vm1066_vm1 = vcmask 293888  }
  0x12   : > { %s1735_s29 = sadd.s32 %s1732_s27, %s1463_s28 }
  0x13   : > { %s1465_s30 = sshll.u32 %s1735_s29, 2  ;;  %s2295_s18 = smov (!%p408_p11, %s1636_s18), 1 }
  0x14   : > { %s1743_s8 = scalar_lea.vmem %s2267_s0, %s1465_s30  ;;  %s1487_s29 = sshll.u32 %s2287_s19, 1 }
  0x15   : > { %v1547_v0 = vld [vmem:[%s1743_s8] sm:$0xff]  ;;  %v1548_v1 = vld [vmem:[%s1743_s8 + $0x8] sm:$0xff]  ;;  %v1549_v2 = vld [vmem:[%s1743_s8 + $0x10] sm:$0xff]  ;;  %s364_s10 = scalar_select %p363_p7, %s1467_s9, 0 }
  0x16   : > { %v1550_v3 = vld [vmem:[%s1743_s8 + $0x18] sm:$0xff]  ;;  %v505_v4 = vshrl.u32 %v1547_v0, 16  ;;  %v508_v5 = vshll.u32 %v1547_v0, 16  ;;  %v512_v6 = vshrl.u32 %v1548_v1, 16  ;;  %v515_v7 = vshll.u32 %v1548_v1, 16  ;;  %v1551_v47 = vld [vmem:[%s1743_s8 + $0x20] sm:$0xff] }
  0x17   : > { %v519_v9 = vshrl.u32 %v1549_v2, 16  ;;  %v526_v10 = vshrl.u32 %v1550_v3, 16  ;;  %v522_v13 = vshll.u32 %v1549_v2, 16  ;;  %s1756_s11 = scalar_select %p435_p9, 1, 0  ;;  %v529_v21 = vshll.u32 %v1550_v3, 16 }
  0x18   : > { %v507_v11 = vrot.slane %v505_v4, 7  ;;  %v514_v12 = vrot.slane %v512_v6, 7  ;;  %s2289_s10 = smov (!%p1468_p8, %s364_s10), 15  ;;  %v533_v58 = vshrl.u32 %v1551_v47, 16  ;;  %s1658_s9 = smov 28  }
  0x19   : > { %v1758_v14 = vrot.slane %v519_v9, 7  ;;  %s1473_s12 = sshll.u32 %s2289_s10, 1  ;;  %v528_v20 = vrot.slane %v526_v10, 7  ;;  %v437_v29 = vstv %s1756_s11  ;;  %s1546_s10 = sadd.s32 8, %s1725_s25 }
  0x1a   : > { %v510_v15 = vor.u32 %v508_v5, %v507_v11  ;;  %v517_v16 = vor.u32 %v515_v7, %v514_v12  ;;  %v602_v17 = vsel %vm1752_vm2, %v514_v12, 0  ;;  %v601_v19 = vsel %vm1752_vm2, %v507_v11, 0  ;;  %s371_s13 = sadd.s32 %s1473_s12, %s1732_s27  ;;  %p1825_p10 = scmp.lt.s32.totalorder %s1546_s10, 15 }
  0x1b   : > { %v747_v18 = vrot.slane %v602_v17, 1  ;;  %v524_v24 = vor.u32 %v522_v13, %v1758_v14  ;;  %v643_v25 = vshll.u32 %v602_v17, 16  ;;  %s1475_s16 = sshll.u32 %s371_s13, 2  ;;  %v531_v35 = vor.u32 %v529_v21, %v528_v20  ;;  %s1659_s25 = smov 16  }
  0x1c   : > { %v1767_v22 = vsel %vm1752_vm2, 0, %v510_v15  ;;  %v1771_v23 = vsel %vm1752_vm2, 0, %v517_v16  ;;  %s373_s28 = scalar_lea.vmem %s2268_s1, %s1475_s16  ;;  %v631_v37 = vshll.u32 %v601_v19, 16  ;;  %vm438_vm5 = vcmp.eq.s32.totalorder %v437_v29, 1  ;;  %s2291_s10 = smov (!%p1825_p10, %s1546_s10), 15  ;;  %v1552_v29 = vld [vmem:[%s1743_s8 + $0x28] sm:$0xff] }
  0x1d   : > { %781 = vrot.lane.b32.xlu1 %v1767_v22, %s1654_s14  ;;  %846 = vrot.lane.b32.xlu2 %v1771_v23, %s1655_s15  ;;  %v746_v26 = vrot.slane %v1771_v23, 1  ;;  %v636_v27 = vshrl.u32 %v1771_v23, 16  ;;  %v638_v28 = vshll.u32 %v1771_v23, 16  ;;  %v626_v30 = vshll.u32 %v1767_v22, 16  ;;  %v431_v33 = vld [vmem:[%s373_s28] sm:$0xf] }
  0x1e   : > { %v432_v34 = vld [vmem:[%s373_s28 + $0x4] sm:$0xf]  ;;  %v1794_v36 = vsel %vm1752_vm2, 0, %v524_v24  ;;  %v645_v39 = vrot.slane %v643_v25, 1  ;;  %v439_v40 = vsel %vm438_vm5, %v431_v33, 0  ;;  %v624_v42 = vshrl.u32 %v1767_v22, 16 }
  0x1f   : > { %v1788_v31 = vsel %vm739_vm3, %v746_v26, %v747_v18  ;;  %v640_v32 = vrot.slane %v638_v28, 1  ;;  %v440_v41 = vsel %vm438_vm5, %v432_v34, 0  ;;  %v628_v43 = vrot.slane %v626_v30, 1  ;;  %s1660_s12 = smov 20   ;;  %s2293_s10 = smov (!%p1825_p10, %s2291_s10), 15 }
  0x20   : > { %768 = vrot.lane.b32.xlu0 %v1788_v31, %s1656_s6  ;;  %v467_v44 = vunpack.c.l.b16 %v439_v40  ;;  %v468_v45 = vunpack.c.l.b16 %v440_v41  ;;  %v1799_v46 = vsel %vm1752_vm2, 0, %v531_v35  ;;  %v744_v48 = vrot.slane %v601_v19, 1  ;;  %s1848_s13 = sshll.u32 %s2293_s10, 1 }
  0x21   : > { %v641_v38 = vor.u32 %v640_v32, %v636_v27  ;;  %v633_v51 = vrot.slane %v631_v37, 1  ;;  %v743_v52 = vrot.slane %v1767_v22, 1  ;;  %v604_v53 = vsel %vm1752_vm2, %v528_v20, 0  ;;  %s388_s16 = sadd.s32 %s1848_s13, %s1732_s27 }
  0x22   : > { %v487_v49 = vpack.c.b16 %v468_v45, %v467_v44  ;;  %v629_v54 = vor.u32 %v628_v43, %v624_v42  ;;  %v662_v57 = vshll.u32 %v1799_v46, 16  ;;  %v660_v61 = vshrl.u32 %v1799_v46, 16  ;;  %s1482_s28 = sshll.u32 %s388_s16, 2 }
  0x23   : > { %v1807_v50 = vsel %vm610_vm4, %v641_v38, %v645_v39  ;;  %v1816_v60 = vsel %vm739_vm3, %v743_v52, %v744_v48  ;;  %v667_v62 = vshll.u32 %v604_v53, 16  ;;  %v535_v4 = vrot.slane %v533_v58, 7  ;;  %s442_s10 = scalar_select %p408_p11, 1, 0 }
  0x24   : > { %v498_v55 = vshrl.u32 %v487_v49, 16  ;;  %v501_v56 = vshll.u32 %v487_v49, 16  ;;  %v1821_v63 = vsel %vm610_vm4, %v629_v54, %v633_v51  ;;  %v664_v2 = vrot.slane %v662_v57, 1  ;;  %s390_s26 = scalar_lea.vmem %s2269_s2, %s1482_s28 }
  0x25   : > { %894 = vrot.lane.b32.xlu1 %v1788_v31, %s1657_s7  ;;  %785 = vrot.lane.b32.xlu2 %v1794_v36, %s1654_s14  ;;  %v536_v5 = vshll.u32 %v1551_v47, 16  ;;  %v669_v10 = vrot.slane %v667_v62, 1  ;;  %v650_v11 = vshll.u32 %v1794_v36, 16  ;;  %v603_v13 = vsel %vm1752_vm2, %v1758_v14, 0 }
  0x26   : > { %v500_v59 = vrot.slane %v498_v55, 7  ;;  %v665_v9 = vor.u32 %v664_v2, %v660_v61  ;;  %v752_v16 = vrot.slane %v1799_v46, 1  ;;  %v753_v17 = vrot.slane %v604_v53, 1 }
  0x27   : > { %v538_v15 = vor.u32 %v536_v5, %v535_v4  ;;  %v648_v20 = vshrl.u32 %v1794_v36, 16  ;;  %v652_v21 = vrot.slane %v650_v11, 1  ;;  %v655_v14 = vshll.u32 %v603_v13, 16 }
  0x28   : > { %874 = vrot.lane.b32.xlu0 %v1807_v50, %s1658_s9  ;;  %v503_v0 = vor.u32 %v501_v56, %v500_v59  ;;  %v600_v1 = vsel %vm1752_vm2, %v500_v59, 0  ;;  %v1855_v19 = vsel %vm610_vm4, %v665_v9, %v669_v10  ;;  %v1867_v25 = vsel %vm739_vm3, %v752_v16, %v753_v17 }
  0x29   : > { %v741_v3 = vrot.slane %v600_v1, 1  ;;  %v1860_v24 = vsel %vm1752_vm2, 0, %v538_v15  ;;  %v619_v28 = vshll.u32 %v600_v1, 16  ;;  %v653_v30 = vor.u32 %v652_v21, %v648_v20 }
  0x2a   : > { %v1831_v6 = vsel %vm1752_vm2, 0, %v503_v0  ;;  %v657_v32 = vrot.slane %v655_v14, 1  ;;  %v674_v33 = vshll.u32 %v1860_v24, 16  ;;  %v605_v34 = vsel %vm1752_vm2, %v535_v4, 0  ;;  %v1553_v4 = vld [vmem:[%s1743_s8 + $0x30] sm:$0xff] }
  0x2b   : > { %v740_v7 = vrot.slane %v1831_v6, 1  ;;  %v614_v18 = vshll.u32 %v1831_v6, 16  ;;  %v612_v26 = vshrl.u32 %v1831_v6, 16  ;;  %v621_v37 = vrot.slane %v619_v28, 1 }
  0x2c   : > { %v540_v38 = vshrl.u32 %v1552_v29, 16  ;;  %v1877_v39 = vsel %vm610_vm4, %v653_v30, %v657_v32  ;;  %v672_v40 = vshrl.u32 %v1860_v24, 16  ;;  %v676_v41 = vrot.slane %v674_v33, 1 }
  0x2d   : > { %809 = vrot.lane.b32.xlu1 %v1821_v63, %s1659_s25  ;;  %829 = vrot.lane.b32.xlu2 %v1816_v60, %s1660_s12  ;;  %v742_v12 = vsel %vm739_vm3, %v740_v7, %v741_v3  ;;  %v616_v27 = vrot.slane %v614_v18, 1  ;;  %v679_v42 = vshll.u32 %v605_v34, 16  ;;  %v543_v45 = vshll.u32 %v1552_v29, 16 }
  0x2e   : > { %v542_v44 = vrot.slane %v540_v38, 7  ;;  %v677_v47 = vor.u32 %v676_v41, %v672_v40  ;;  %v749_v49 = vrot.slane %v1794_v36, 1  ;;  %v750_v51 = vrot.slane %v603_v13, 1 }
  0x2f   : > { %v617_v35 = vor.u32 %v616_v27, %v612_v26  ;;  %v681_v48 = vrot.slane %v679_v42, 1  ;;  %v755_v57 = vrot.slane %v1860_v24, 1  ;;  %v756_v58 = vrot.slane %v605_v34, 1 }
  0x30   : > { %764 = vrot.lane.b32.xlu0 %v742_v12, %s1656_s6  ;;  %v545_v52 = vor.u32 %v543_v45, %v542_v44  ;;  %v1893_v54 = vsel %vm739_vm3, %v749_v49, %v750_v51  ;;  %v606_v59 = vsel %vm1752_vm2, %v542_v44, 0  ;;  %v547_v7 = vshrl.u32 %v1553_v4, 16 }
  0x31   : > { %v622_v43 = vsel %vm610_vm4, %v617_v35, %v621_v37  ;;  %v1888_v53 = vsel %vm610_vm4, %v677_v47, %v681_v48  ;;  %v691_v0 = vshll.u32 %v606_v59, 16  ;;  %v1911_v1 = vsel %vm739_vm3, %v755_v57, %v756_v58 }
  0x32   : > { %v1899_v55 = vsel %vm1752_vm2, 0, %v545_v52  ;;  %v759_v10 = vrot.slane %v606_v59, 1  ;;  %v549_v11 = vrot.slane %v547_v7, 7  ;;  %v550_v12 = vshll.u32 %v1553_v4, 16  ;;  %v1050_v52 = vld [vmem:[%s2270_s3 + $0x10] sm:$0x3] }
  0x33   : > { %v686_v56 = vshll.u32 %v1899_v55, 16  ;;  %v684_v61 = vshrl.u32 %v1899_v55, 16  ;;  %v693_v3 = vrot.slane %v691_v0, 1  ;;  %v758_v9 = vrot.slane %v1899_v55, 1  ;;  %v1555_v4 = vld [vmem:[%s2270_s3] sm:$0xff] }
  0x34   : > { %v607_v17 = vsel %vm1752_vm2, %v549_v11, 0  ;;  %v443_v0 = vstv %s442_s10 }
  0x35   : > { %715 = vrot.lane.b32.xlu1 %v1855_v19, %s1661_s17  ;;  %711 = vrot.lane.b32.xlu2 %v1807_v50, %s1661_s17  ;;  %v688_v62 = vrot.slane %v686_v56, 1  ;;  %v1929_v13 = vsel %vm739_vm3, %v758_v9, %v759_v10  ;;  %v703_v21 = vshll.u32 %v607_v17, 16  ;;  %v762_v30 = vrot.slane %v607_v17, 1 }
  0x36   : > { %v1060_v56 = vunpack.c.l.b16 %v1050_v52  ;;  %vm444_vm7 = vcmp.eq.s32.totalorder %v443_v0, 1 }
  0x37   : > { %v689_v2 = vor.u32 %v688_v62, %v684_v61  ;;  %v705_v26 = vrot.slane %v703_v21, 1  ;;  %v1556_v62 = vld [vmem:[%s2270_s3 + $0x8] sm:$0xff] }
  0x38   : > { %772 = vrot.lane.b32.xlu0 %v1867_v25, %s1656_s6 }
  0x39   : > { %v1919_v5 = vsel %vm610_vm4, %v689_v2, %v693_v3  ;;  %v433_v2 = vld [vmem:[%s390_s26] sm:$0xf]  ;;  %v434_v3 = vld [vmem:[%s390_s26 + $0x4] sm:$0xf] }
  0x3a   : > { %v445_v9 = vsel %vm444_vm7, %v433_v2, 0  ;;  %v446_v10 = vsel %vm444_vm7, %v434_v3, 0 }
  0x3d   : > { %813 = vrot.lane.b32.xlu1 %v1877_v39, %s1659_s25  ;;  %789 = vrot.lane.b32.xlu2 %v1860_v24, %s1654_s14 }
  0x40   : > { %707 = vrot.lane.b32.xlu0 %v622_v43, %s1661_s17 }
  0x45   : > { %817 = vrot.lane.b32.xlu1 %v1888_v53, %s1659_s25  ;;  %850 = vrot.lane.b32.xlu2 %v1799_v46, %s1655_s15 }
  0x48   : > { %833 = vrot.lane.b32.xlu0 %v1893_v54, %s1660_s12 }
  0x4d   : > { %878 = vrot.lane.b32.xlu1 %v1855_v19, %s1658_s9  ;;  %854 = vrot.lane.b32.xlu2 %v1899_v55, %s1655_s15 }
  0x50   : > { %837 = vrot.lane.b32.xlu0 %v1911_v1, %s1660_s12 }
  0x55   : > { %709 = vrot.lane.b32.xlu1 %v1821_v63, %s1661_s17  ;;  %882 = vrot.lane.b32.xlu2 %v1919_v5, %s1658_s9  ;;  %v552_v63 = vor.u32 %v550_v12, %v549_v11 }
  0x57   : > { %v1939_v15 = vsel %vm1752_vm2, 0, %v552_v63  ;;  %v485_v63 = vunpack.c.l.b16 %v445_v9 }
  0x58   : > { %898 = vrot.lane.b32.xlu0 %v1867_v25, %s1657_s7  ;;  %v698_v16 = vshll.u32 %v1939_v15, 16  ;;  %v696_v18 = vshrl.u32 %v1939_v15, 16  ;;  %v761_v29 = vrot.slane %v1939_v15, 1 }
  0x5a   : > { %v700_v20 = vrot.slane %v698_v16, 1  ;;  %v1963_v33 = vsel %vm739_vm3, %v761_v29, %v762_v30 }
  0x5c   : > { %v701_v14 = vor.u32 %v700_v20, %v696_v18 }
  0x5d   : > { %902 = vrot.lane.b32.xlu1 %v1929_v13, %s1657_s7  ;;  %719 = vrot.lane.b32.xlu2 %v1919_v5, %s1661_s17 }
  0x5e   : > { %v1953_v28 = vsel %vm610_vm4, %v701_v14, %v705_v26 }
  0x60   : > { %766 = vrot.lane.b32.xlu0 %v1816_v60, %s1656_s6  ;;  %v1554_v60 = vld [vmem:[%s1743_s8 + $0x38] sm:$0xff] }
  0x61   : > { %v554_v27 = vshrl.u32 %v1554_v60, 16  ;;  %v557_v32 = vshll.u32 %v1554_v60, 16 }
  0x65   : > { %776 = vrot.lane.b32.xlu1 %v1929_v13, %s1656_s6  ;;  %811 = vrot.lane.b32.xlu2 %v1807_v50, %s1659_s25  ;;  %v556_v50 = vrot.slane %v554_v27, 7 }
  0x67   : > { %v559_v34 = vor.u32 %v557_v32, %v556_v50  ;;  %v608_v38 = vsel %vm1752_vm2, %v556_v50, 0 }
  0x68   : > { %783 = vrot.lane.b32.xlu0 %v1771_v23, %s1654_s14  ;;  %v805_v42 = vshll.u32 %v608_v38, 16  ;;  %v827_v44 = vrot.slane %v608_v38, 1 }
  0x6a   : > { %v807_v48 = vrot.slane %v805_v42, 1 }
  0x6d   : > { %831 = vrot.lane.b32.xlu1 %v1788_v31, %s1660_s12  ;;  %821 = vrot.lane.b32.xlu2 %v1953_v28, %s1659_s25  ;;  %v1971_v31 = vsel %vm1752_vm2, 0, %v559_v34 }
  0x6e   : > { %v800_v37 = vshll.u32 %v1971_v31, 16  ;;  %v798_v40 = vshrl.u32 %v1971_v31, 16  ;;  %v826_v43 = vrot.slane %v1971_v31, 1 }
  0x70   : > { %793 = vrot.lane.b32.xlu0 %v1939_v15, %s1654_s14  ;;  %v802_v41 = vrot.slane %v800_v37, 1  ;;  %v1991_v49 = vsel %vm739_vm3, %v826_v43, %v827_v44 }
  0x72   : > { %v803_v47 = vor.u32 %v802_v41, %v798_v40 }
  0x75   : > { %841 = vrot.lane.b32.xlu1 %v1963_v33, %s1660_s12  ;;  %876 = vrot.lane.b32.xlu2 %v1877_v39, %s1658_s9 }
  0x77   : > { %v1973_v35 = vpop.permute.xlu2 %846 }
  0x78   : > { %848 = vrot.lane.b32.xlu0 %v1794_v36, %s1655_s15 }
  0x7d   : > { %896 = vrot.lane.b32.xlu1 %v1893_v54, %s1657_s7  ;;  %713 = vrot.lane.b32.xlu2 %v1877_v39, %s1661_s17  ;;  %v1996_v39 = vsel %vm610_vm4, %v803_v47, %v807_v48 }
  0x7f   : > { %v1986_v45 = vpop.permute.xlu2 %785 }
  0x80   : > { %858 = vrot.lane.b32.xlu0 %v1971_v31, %s1655_s15 }
  0x85   : > { %770 = vrot.lane.b32.xlu1 %v1893_v54, %s1656_s6  ;;  %906 = vrot.lane.b32.xlu2 %v1991_v49, %s1657_s7  ;;  %v1063_v54 = vpack.c.b16 %v1060_v56, %v1060_v56 }
  0x87   : > { %v2000_v51 = vpop.permute.xlu2 %829  ;;  %v1085_v58 = vsel %vm1083_vm6, %v1063_v54, 0 }
  0x88   : > { %886 = vrot.lane.b32.xlu0 %v1996_v39, %s1658_s9  ;;  %1092 = vmatpush.bf16.msra.mxu0 %v1085_v58 }
  0x89   : > { %1557 = vmatpush.bf16.msra.mxu1 %v1085_v58  ;;  %1558 = vmatpush.bf16.msra.mxu2 %v1085_v58 }
  0x8a   : > { %1559 = vmatpush.bf16.msra.mxu3 %v1085_v58 }
  0x8c   : > { %1093 = vmatpush.bf16.msra.mxu0 %v1556_v62 }
  0x8d   : > { %787 = vrot.lane.b32.xlu1 %v1799_v46, %s1654_s14  ;;  %774 = vrot.lane.b32.xlu2 %v1911_v1, %s1656_s6 }
  0x8e   : > { %1560 = vmatpush.bf16.msra.mxu1 %v1556_v62  ;;  %1561 = vmatpush.bf16.msra.mxu2 %v1556_v62 }
  0x8f   : > { %v2015_v57 = vpop.permute.xlu1 %781  ;;  %v2021_v59 = vpop.permute.xlu2 %711  ;;  %1562 = vmatpush.bf16.msra.mxu3 %v1556_v62 }
  0x90   : > { %717 = vrot.lane.b32.xlu0 %v1888_v53, %s1661_s17  ;;  %1094 = vmatpush.bf16.msra.mxu0 %v1555_v4 }
  0x92   : > { %v2026_v61 = vpop.permute.xlu0 %768  ;;  %1563 = vmatpush.bf16.msra.mxu1 %v1555_v4  ;;  %1564 = vmatpush.bf16.msra.mxu2 %v1555_v4 }
  0x93   : > { %1565 = vmatpush.bf16.msra.mxu3 %v1555_v4 }
  0x95   : > { %791 = vrot.lane.b32.xlu1 %v1899_v55, %s1654_s14  ;;  %835 = vrot.lane.b32.xlu2 %v1867_v25, %s1660_s12  ;;  %v486_v25 = vunpack.c.l.b16 %v446_v10 }
  0x97   : > { %v2038_v7 = vpop.permute.xlu1 %894  ;;  %v2042_v11 = vpop.permute.xlu2 %789  ;;  %v496_v16 = vpack.c.b16 %v486_v25, %v485_v63 }
  0x98   : > { %815 = vrot.lane.b32.xlu0 %v1855_v19, %s1659_s25 }
  0x99   : > { %v561_v18 = vshrl.u32 %v496_v16, 16  ;;  %v564_v60 = vshll.u32 %v496_v16, 16 }
  0x9a   : > { %v875_v12 = vpop.permute.xlu0 %874 }
  0x9b   : > { %v563_v21 = vrot.slane %v561_v18, 7 }
  0x9d   : > { %852 = vrot.lane.b32.xlu1 %v1860_v24, %s1655_s15  ;;  %839 = vrot.lane.b32.xlu2 %v1929_v13, %s1660_s12  ;;  %v566_v26 = vor.u32 %v564_v60, %v563_v21  ;;  %v609_v37 = vsel %vm1752_vm2, %v563_v21, 0 }
  0x9f   : > { %v810_v17 = vpop.permute.xlu1 %809  ;;  %v2050_v20 = vpop.permute.xlu2 %850  ;;  %v599_v27 = vsel %vm1752_vm2, 0, %v566_v26  ;;  %vm1152_vm2 = vcmask 60416  }
  0xa0   : > { %819 = vrot.lane.b32.xlu0 %v1919_v5, %s1659_s25  ;;  %v865_v29 = vshll.u32 %v599_v27, 16  ;;  %v863_v50 = vshrl.u32 %v599_v27, 16  ;;  %v891_v54 = vrot.slane %v599_v27, 1 }
  0xa2   : > { %v765_v19 = vpop.permute.xlu0 %764  ;;  %v867_v32 = vrot.slane %v865_v29, 1 }
  0xa4   : > { %v868_v42 = vor.u32 %v867_v32, %v863_v50 }
  0xa5   : > { %856 = vrot.lane.b32.xlu1 %v1939_v15, %s1655_s15  ;;  %900 = vrot.lane.b32.xlu2 %v1911_v1, %s1657_s7 }
  0xa7   : > { %v716_v14 = vpop.permute.xlu1 %715  ;;  %v2060_v5 = vpop.permute.xlu2 %854 }
  0xa8   : > { %880 = vrot.lane.b32.xlu0 %v1888_v53, %s1658_s9  ;;  %v920_v56 = vsel %vm910_vm8, %v1799_v46, %v716_v14 }
  0xaa   : > { %v773_v13 = vpop.permute.xlu0 %772 }
  0xab   : > { %v937_v62 = vsel %vm927_vm9, %v920_v56, %v773_v13 }
  0xad   : > { %904 = vrot.lane.b32.xlu1 %v1963_v33, %s1657_s7  ;;  %721 = vrot.lane.b32.xlu2 %v1953_v28, %s1661_s17 }
  0xaf   : > { %v814_v1 = vpop.permute.xlu1 %813  ;;  %v883_v41 = vpop.permute.xlu2 %882 }
  0xb0   : > { %884 = vrot.lane.b32.xlu0 %v1953_v28, %s1658_s9 }
  0xb2   : > { %v708_v53 = vpop.permute.xlu0 %707 }
  0xb3   : > { %v912_v30 = vsel %vm910_vm8, %v1831_v6, %v708_v53  ;;  %v870_v6 = vshll.u32 %v609_v37, 16 }
  0xb4   : > { %v929_v34 = vsel %vm927_vm9, %v912_v30, %v765_v19 }
  0xb5   : > { %v946_v38 = vsel %vm944_vm10, %v929_v34, %v2015_v57  ;;  %795 = vrot.lane.b32.xlu1 %v1971_v31, %s1654_s14  ;;  %823 = vrot.lane.b32.xlu2 %v1996_v39, %s1659_s25  ;;  %v872_v43 = vrot.slane %v870_v6, 1  ;;  %v892_v57 = vrot.slane %v609_v37, 1 }
  0xb6   : > { %v963_v28 = vsel %vm961_vm12, %v946_v38, %v810_v17 }
  0xb7   : > { %v818_v40 = vpop.permute.xlu1 %817  ;;  %v980_v8 = vsel %vm978_vm11, %v963_v28, %v2000_v51  ;;  %v873_v39 = vsel %vm610_vm4, %v868_v42, %v872_v43  ;;  %v720_v51 = vpop.permute.xlu2 %719 }
  0xb8   : > { %778 = vrot.lane.b32.xlu0 %v1963_v33, %s1656_s6  ;;  %v997_v31 = vsel %vm995_vm13, %v980_v8, %v1973_v35  ;;  %v916_v33 = vsel %vm910_vm8, %v1771_v23, %v2021_v59  ;;  %v893_v59 = vsel %vm739_vm3, %v891_v54, %v892_v57  ;;  %s2175_s6 = scalar_lea.vmem %s2271_s4, %s1465_s30  ;;  %s411_s30 = sadd.s32 %s1487_s29, %s2295_s18  ;;  %vm1261_vm3 = vcmask 58368  }
  0xb9   : > { %v1014_v44 = vsel %vm1012_vm14, %v997_v31, %v875_v12  ;;  %v933_v52 = vsel %vm927_vm9, %v916_v33, %v2026_v61  ;;  %v954_v61 = vsel %vm944_vm10, %v937_v62, %v2042_v11 }
  0xba   : > { %v834_v47 = vpop.permute.xlu0 %833  ;;  %v1031_v48 = vsel %vm1029_vm15, %v1014_v44, %v2038_v7  ;;  %v950_v0 = vsel %vm944_vm10, %v933_v52, %v1986_v45  ;;  %v971_v46 = vsel %vm961_vm12, %v954_v61, %v818_v40 }
  0xbb   : > { %1529 = vmatmul.msk.bf16.vlgmr.msra.gmra.mxu0 %vm1066_vm1, %v1031_v48  ;;  %v967_v23 = vsel %vm961_vm12, %v950_v0, %v814_v1 }
  0xbd   : > { %860 = vrot.lane.b32.xlu1 %v599_v27, %s1655_s15  ;;  %888 = vrot.lane.b32.xlu2 %v873_v39, %s1658_s9 }
  0xbf   : > { %v879_v35 = vpop.permute.xlu1 %878  ;;  %v812_v45 = vpop.permute.xlu2 %811 }
  0xc0   : > { %843 = vrot.lane.b32.xlu0 %v1991_v49, %s1660_s12  ;;  %v984_v49 = vsel %vm978_vm11, %v967_v23, %v834_v47 }
  0xc1   : > { %v1001_v3 = vsel %vm995_vm13, %v984_v49, %v2050_v20 }
  0xc2   : > { %v838_v58 = vpop.permute.xlu0 %837  ;;  %v1018_v7 = vsel %vm1012_vm14, %v1001_v3, %v879_v35 }
  0xc3   : > { %v988_v4 = vsel %vm978_vm11, %v971_v46, %v838_v58 }
  0xc4   : > { %v1005_v12 = vsel %vm995_vm13, %v988_v4, %v2060_v5 }
  0xc5   : > { %v1022_v11 = vsel %vm1012_vm14, %v1005_v12, %v883_v41 }
  0xc7   : > { %v710_v2 = vpop.permute.xlu1 %709  ;;  %v822_v17 = vpop.permute.xlu2 %821 }
  0xc8   : > { %908 = vrot.lane.b32.xlu0 %v893_v59, %s1657_s7  ;;  %v914_v14 = vsel %vm910_vm8, %v1767_v22, %v710_v2  ;;  %v924_v22 = vsel %vm910_vm8, %v1899_v55, %v720_v51  ;;  %s1488_s7 = sshll.u32 %s411_s30, 1 }
  0xc9   : > { %s413_s12 = scalar_lea.vmem %s2272_s5, %s1488_s7 }
  0xca   : > { %v899_v9 = vpop.permute.xlu0 %898 }
  0xcb   : > { %v1035_v10 = vsel %vm1029_vm15, %v1018_v7, %v899_v9 }
  0xcc   : > { %1531 = vmatmul.msk.bf16.vlgmr.msra.gmra.mxu1 %vm1066_vm1, %v1035_v10 }
  0xcf   : > { %v903_v63 = vpop.permute.xlu1 %902  ;;  %v877_v20 = vpop.permute.xlu2 %876 }
  0xd0   : > { %v1039_v25 = vsel %vm1029_vm15, %v1022_v11, %v903_v63 }
  0xd1   : > { %1533 = vmatmul.msk.bf16.vlgmr.msra.gmra.mxu2 %vm1066_vm1, %v1039_v25 }
  0xd2   : > { %v767_v16 = vpop.permute.xlu0 %766 }
  0xd3   : > { %v931_v13 = vsel %vm927_vm9, %v914_v14, %v767_v16 }
  0xd7   : > { %v777_v19 = vpop.permute.xlu1 %776  ;;  %v714_v27 = vpop.permute.xlu2 %713 }
  0xd8   : > { %v941_v6 = vsel %vm927_vm9, %v924_v22, %v777_v19  ;;  %v918_v56 = vsel %vm910_vm8, %v1794_v36, %v714_v27 }
  0xda   : > { %v784_v18 = vpop.permute.xlu0 %783 }
  0xdb   : > { %v948_v26 = vsel %vm944_vm10, %v931_v13, %v784_v18 }
  0xdc   : > { %v965_v1 = vsel %vm961_vm12, %v948_v26, %v812_v45 }
  0xdf   : > { %v832_v21 = vpop.permute.xlu1 %831  ;;  %v907_v37 = vpop.permute.xlu2 %906 }
  0xe0   : > { %v982_v53 = vsel %vm978_vm11, %v965_v1, %v832_v21 }
  0xe2   : > { %v794_v60 = vpop.permute.xlu0 %793 }
  0xe3   : > { %v958_v28 = vsel %vm944_vm10, %v941_v6, %v794_v60 }
  0xe4   : > { %v975_v8 = vsel %vm961_vm12, %v958_v28, %v822_v17 }
  0xe7   : > { %v842_v5 = vpop.permute.xlu1 %841  ;;  %v775_v44 = vpop.permute.xlu2 %774 }
  0xe8   : > { %v992_v41 = vsel %vm978_vm11, %v975_v8, %v842_v5 }
  0xea   : > { %v849_v29 = vpop.permute.xlu0 %848 }
  0xeb   : > { %v999_v30 = vsel %vm995_vm13, %v982_v53, %v849_v29 }
  0xec   : > { %v1016_v50 = vsel %vm1012_vm14, %v999_v30, %v877_v20 }
  0xef   : > { %v897_v32 = vpop.permute.xlu1 %896  ;;  %v836_v39 = vpop.permute.xlu2 %835 }
  0xf0   : > { %v1033_v34 = vsel %vm1029_vm15, %v1016_v50, %v897_v32 }
  0xf1   : > { %1530 = vmatmul.msk.bf16.gmra.mxu0 %vm1066_vm1, %v1033_v34 }
  0xf2   : > { %v859_v38 = vpop.permute.xlu0 %858 }
  0xf3   : > { %v1009_v42 = vsel %vm995_vm13, %v992_v41, %v859_v38 }
  0xf7   : > { %v771_v40 = vpop.permute.xlu1 %770  ;;  %v840_v52 = vpop.permute.xlu2 %839 }
  0xf8   : > { %v935_v57 = vsel %vm927_vm9, %v918_v56, %v771_v40 }
  0xfa   : > { %v887_v43 = vpop.permute.xlu0 %886 }
  0xfb   : > { %v1026_v31 = vsel %vm1012_vm14, %v1009_v42, %v887_v43 }
  0xfc   : > { %v1043_v55 = vsel %vm1029_vm15, %v1026_v31, %v907_v37 }
  0xfd   : > { %1535 = vmatmul.msk.bf16.vlgmr.msra.gmra.mxu3 %vm1066_vm1, %v1043_v55 }
  0xff   : > { %v788_v47 = vpop.permute.xlu1 %787  ;;  %v901_v49 = vpop.permute.xlu2 %900 }
 0x100   : > { %v952_v58 = vsel %vm944_vm10, %v935_v57, %v788_v47 }
 0x102   : > { %v718_v48 = vpop.permute.xlu0 %717 }
 0x103   : > { %v922_v23 = vsel %vm910_vm8, %v1860_v24, %v718_v48 }
 0x104   : > { %v939_v36 = vsel %vm927_vm9, %v922_v23, %v775_v44 }
 0x107   : > { %v792_v33 = vpop.permute.xlu1 %791  ;;  %v722_v11 = vpop.permute.xlu2 %721 }
 0x108   : > { %v956_v4 = vsel %vm944_vm10, %v939_v36, %v792_v33  ;;  %v926_v25 = vsel %vm910_vm8, %v1939_v15, %v722_v11 }
 0x10a   : > { %v816_v35 = vpop.permute.xlu0 %815 }
 0x10b   : > { %v969_v62 = vsel %vm961_vm12, %v952_v58, %v816_v35 }
 0x10c   : > { %v986_v59 = vsel %vm978_vm11, %v969_v62, %v836_v39 }
 0x10f   : > { %v853_v51 = vpop.permute.xlu1 %852  ;;  %v824_v18 = vpop.permute.xlu2 %823 }
 0x110   : > { %v1003_v61 = vsel %vm995_vm13, %v986_v59, %v853_v51 }
 0x112   : > { %v820_v54 = vpop.permute.xlu0 %819 }
 0x113   : > { %v973_v45 = vsel %vm961_vm12, %v956_v4, %v820_v54 }
 0x114   : > { %v990_v24 = vsel %vm978_vm11, %v973_v45, %v840_v52 }
 0x117   : > { %v857_v0 = vpop.permute.xlu1 %856  ;;  %v889_v5 = vpop.permute.xlu2 %888 }
 0x118   : > { %v1007_v9 = vsel %vm995_vm13, %v990_v24, %v857_v0 }
 0x11a   : > { %v881_v2 = vpop.permute.xlu0 %880 }
 0x11b   : > { %v1020_v46 = vsel %vm1012_vm14, %v1003_v61, %v881_v2 }
 0x11c   : > { %v1037_v3 = vsel %vm1029_vm15, %v1020_v46, %v901_v49 }
 0x11d   : > { %1532 = vmatmul.msk.bf16.gmra.mxu1 %vm1066_vm1, %v1037_v3 }
 0x11f   : > { %v905_v7 = vpop.permute.xlu1 %904 }
 0x122   : > { %v885_v10 = vpop.permute.xlu0 %884 }
 0x123   : > { %v1024_v12 = vsel %vm1012_vm14, %v1007_v9, %v885_v10 }
 0x124   : > { %v1041_v63 = vsel %vm1029_vm15, %v1024_v12, %v905_v7 }
 0x125   : > { %1534 = vmatmul.msk.bf16.gmra.mxu2 %vm1066_vm1, %v1041_v63 }
 0x127   : > { %v796_v17 = vpop.permute.xlu1 %795 }
 0x12a   : > { %v779_v16 = vpop.permute.xlu0 %778 }
 0x12b   : > { %v943_v19 = vsel %vm927_vm9, %v926_v25, %v779_v16 }
 0x12c   : > { %v960_v20 = vsel %vm944_vm10, %v943_v19, %v796_v17 }
 0x12d   : > { %v977_v60 = vsel %vm961_vm12, %v960_v20, %v824_v18 }
 0x12f   : > { %v861_v13 = vpop.permute.xlu1 %860 }
 0x132   : > { %v844_v21 = vpop.permute.xlu0 %843 }
 0x133   : > { %v994_v14 = vsel %vm978_vm11, %v977_v60, %v844_v21 }
 0x134   : > { %v1011_v26 = vsel %vm995_vm13, %v994_v14, %v861_v13 }
 0x135   : > { %v1028_v1 = vsel %vm1012_vm14, %v1011_v26, %v889_v5 }
 0x138   : > { %v1096_v15 = vpop.f32.mrf.mxu0 }
 0x139   : > { %v1136_v27 = vpack.c.bf16 %v1096_v15, %v1096_v15  ;;  %v1206_v30 = vmul.f32 %v1096_v15, %v1096_v15  ;;  %v1169_v32 = vsel %vm927_vm9, %v1096_v15, 0.0 }
 0x13a   : > { %v909_v29 = vpop.permute.xlu0 %908 }
 0x13b   : > { %1153 = vst.msk [vmem:[%s2175_s6] sm:$0xf] %vm1152_vm2, %v1136_v27  ;;  %v1045_v53 = vsel %vm1029_vm15, %v1028_v1, %v909_v29  ;;  %v1222_v6 = vsel %vm927_vm9, %v1206_v30, 0.0 }
 0x13c   : > { %1536 = vmatmul.msk.bf16.gmra.mxu3 %vm1066_vm1, %v1045_v53 }
 0x140   : > { %v1098_v50 = vpop.f32.mrf.mxu0 }
 0x141   : > { %v1137_v34 = vpack.c.bf16 %v1098_v50, %v1098_v50  ;;  %v1170_v22 = vsel %vm927_vm9, %v1098_v50, 0.0  ;;  %v1207_v37 = vmul.f32 %v1098_v50, %v1098_v50 }
 0x142   : > { %v1171_v38 = vadd.f32 %v1170_v22, %v1169_v32 }
 0x143   : > { %1154 = vst.msk [vmem:[%s2175_s6 + $0x4] sm:$0xf] %vm1152_vm2, %v1137_v34  ;;  %v1223_v28 = vsel %vm927_vm9, %v1207_v37, 0.0 }
 0x144   : > { %v1224_v40 = vadd.f32 %v1223_v28, %v1222_v6 }
 0x149   : > { %v1106_v8 = vpop.f32.mrf.mxu1 }
 0x14a   : > { %v1140_v41 = vpack.c.bf16 %v1106_v8, %v1106_v8  ;;  %v1210_v54 = vmul.f32 %v1106_v8, %v1106_v8  ;;  %v1176_v59 = vsel %vm927_vm9, %v1106_v8, 0.0 }
 0x14c   : > { %1157 = vst.msk [vmem:[%s2175_s6 + $0x10] sm:$0xf] %vm1152_vm2, %v1140_v41  ;;  %v1229_v46 = vsel %vm927_vm9, %v1210_v54, 0.0 }
 0x151   : > { %v1108_v42 = vpop.f32.mrf.mxu1 }
 0x152   : > { %v1141_v43 = vpack.c.bf16 %v1108_v42, %v1108_v42  ;;  %v1211_v10 = vmul.f32 %v1108_v42, %v1108_v42  ;;  %v1178_v11 = vsel %vm927_vm9, %v1108_v42, 0.0 }
 0x154   : > { %1158 = vst.msk [vmem:[%s2175_s6 + $0x14] sm:$0xf] %vm1152_vm2, %v1141_v43  ;;  %v1116_v31 = vpop.f32.mrf.mxu2  ;;  %v1231_v16 = vsel %vm927_vm9, %v1211_v10, 0.0 }
 0x155   : > { %v1144_v44 = vpack.c.bf16 %v1116_v31, %v1116_v31  ;;  %v1214_v21 = vmul.f32 %v1116_v31, %v1116_v31  ;;  %v1184_v15 = vsel %vm927_vm9, %v1116_v31, 0.0 }
 0x157   : > { %1161 = vst.msk [vmem:[%s2175_s6 + $0x20] sm:$0xf] %vm1152_vm2, %v1144_v44  ;;  %v1237_v53 = vsel %vm927_vm9, %v1214_v21, 0.0 }
 0x15c   : > { %v1118_v55 = vpop.f32.mrf.mxu2 }
 0x15d   : > { %v1145_v47 = vpack.c.bf16 %v1118_v55, %v1118_v55  ;;  %v1215_v32 = vmul.f32 %v1118_v55, %v1118_v55  ;;  %v1186_v22 = vsel %vm927_vm9, %v1118_v55, 0.0 }
 0x15f   : > { %1162 = vst.msk [vmem:[%s2175_s6 + $0x24] sm:$0xf] %vm1152_vm2, %v1145_v47  ;;  %v1239_v6 = vsel %vm927_vm9, %v1215_v32, 0.0 }
 0x16e   : > { %v1101_v48 = vpop.f32.mrf.mxu0 }
 0x16f   : > { %v1138_v39 = vpack.c.bf16 %v1101_v48, %v1101_v48  ;;  %v1172_v33 = vsel %vm927_vm9, %v1101_v48, 0.0  ;;  %v1208_v51 = vmul.f32 %v1101_v48, %v1101_v48 }
 0x170   : > { %v1173_v35 = vadd.f32 %v1172_v33, %v1171_v38 }
 0x171   : > { %1155 = vst.msk [vmem:[%s2175_s6 + $0x8] sm:$0xf] %vm1152_vm2, %v1138_v39  ;;  %v1225_v52 = vsel %vm927_vm9, %v1208_v51, 0.0 }
 0x172   : > { %v1226_v0 = vadd.f32 %v1225_v52, %v1224_v40 }
 0x176   : > { %v1103_v56 = vpop.f32.mrf.mxu0 }
 0x177   : > { %v1139_v57 = vpack.c.bf16 %v1103_v56, %v1103_v56  ;;  %v1174_v58 = vsel %vm927_vm9, %v1103_v56, 0.0  ;;  %v1209_v62 = vmul.f32 %v1103_v56, %v1103_v56 }
 0x178   : > { %v1175_v23 = vadd.f32 %v1174_v58, %v1173_v35 }
 0x179   : > { %1156 = vst.msk [vmem:[%s2175_s6 + $0xc] sm:$0xf] %vm1152_vm2, %v1139_v57  ;;  %v1227_v49 = vsel %vm927_vm9, %v1209_v62, 0.0 }
 0x17a   : > { %v1177_v61 = vadd.f32 %v1176_v59, %v1175_v23  ;;  %v1228_v2 = vadd.f32 %v1227_v49, %v1226_v0 }
 0x17c   : > { %v1230_v36 = vadd.f32 %v1229_v46, %v1228_v2  ;;  %v1179_v25 = vadd.f32 %v1178_v11, %v1177_v61 }
 0x17e   : > { %v1232_v18 = vadd.f32 %v1231_v16, %v1230_v36 }
 0x180   : > { %v1126_v3 = vpop.f32.mrf.mxu3 }
 0x181   : > { %v1148_v4 = vpack.c.bf16 %v1126_v3, %v1126_v3  ;;  %v1218_v43 = vmul.f32 %v1126_v3, %v1126_v3  ;;  %v1192_v39 = vsel %vm927_vm9, %v1126_v3, 0.0 }
 0x183   : > { %1165 = vst.msk [vmem:[%s2175_s6 + $0x30] sm:$0xf] %vm1152_vm2, %v1148_v4  ;;  %v1245_v52 = vsel %vm927_vm9, %v1218_v43, 0.0 }
 0x188   : > { %v1128_v45 = vpop.f32.mrf.mxu3 }
 0x189   : > { %v1149_v7 = vpack.c.bf16 %v1128_v45, %v1128_v45  ;;  %v1219_v58 = vmul.f32 %v1128_v45, %v1128_v45  ;;  %v1194_v0 = vsel %vm927_vm9, %v1128_v45, 0.0 }
 0x18b   : > { %1166 = vst.msk [vmem:[%s2175_s6 + $0x34] sm:$0xf] %vm1152_vm2, %v1149_v7  ;;  %v1247_v49 = vsel %vm927_vm9, %v1219_v58, 0.0 }
 0x19a   : > { %v1111_v24 = vpop.f32.mrf.mxu1 }
 0x19b   : > { %v1142_v9 = vpack.c.bf16 %v1111_v24, %v1111_v24  ;;  %v1212_v12 = vmul.f32 %v1111_v24, %v1111_v24  ;;  %v1180_v63 = vsel %vm927_vm9, %v1111_v24, 0.0 }
 0x19c   : > { %v1181_v19 = vadd.f32 %v1180_v63, %v1179_v25 }
 0x19d   : > { %1159 = vst.msk [vmem:[%s2175_s6 + $0x18] sm:$0xf] %vm1152_vm2, %v1142_v9  ;;  %v1233_v17 = vsel %vm927_vm9, %v1212_v12, 0.0 }
 0x19e   : > { %v1234_v26 = vadd.f32 %v1233_v17, %v1232_v18 }
 0x1a2   : > { %v1113_v20 = vpop.f32.mrf.mxu1 }
 0x1a3   : > { %v1143_v60 = vpack.c.bf16 %v1113_v20, %v1113_v20  ;;  %v1182_v14 = vsel %vm927_vm9, %v1113_v20, 0.0  ;;  %v1213_v13 = vmul.f32 %v1113_v20, %v1113_v20 }
 0x1a4   : > { %v1183_v5 = vadd.f32 %v1182_v14, %v1181_v19 }
 0x1a5   : > { %1160 = vst.msk [vmem:[%s2175_s6 + $0x1c] sm:$0xf] %vm1152_vm2, %v1143_v60  ;;  %v1235_v27 = vsel %vm927_vm9, %v1213_v13, 0.0 }
 0x1a6   : > { %v1185_v1 = vadd.f32 %v1184_v15, %v1183_v5  ;;  %v1236_v29 = vadd.f32 %v1235_v27, %v1234_v26 }
 0x1a8   : > { %v1238_v30 = vadd.f32 %v1237_v53, %v1236_v29  ;;  %v1121_v50 = vpop.f32.mrf.mxu2  ;;  %v1187_v38 = vadd.f32 %v1186_v22, %v1185_v1 }
 0x1a9   : > { %v1146_v34 = vpack.c.bf16 %v1121_v50, %v1121_v50  ;;  %v1216_v37 = vmul.f32 %v1121_v50, %v1121_v50  ;;  %v1188_v28 = vsel %vm927_vm9, %v1121_v50, 0.0 }
 0x1aa   : > { %v1240_v40 = vadd.f32 %v1239_v6, %v1238_v30  ;;  %v1189_v41 = vadd.f32 %v1188_v28, %v1187_v38 }
 0x1ab   : > { %1163 = vst.msk [vmem:[%s2175_s6 + $0x28] sm:$0xf] %vm1152_vm2, %v1146_v34  ;;  %v1241_v8 = vsel %vm927_vm9, %v1216_v37, 0.0 }
 0x1ac   : > { %v1242_v47 = vadd.f32 %v1241_v8, %v1240_v40 }
 0x1b0   : > { %v1123_v42 = vpop.f32.mrf.mxu2 }
 0x1b1   : > { %v1147_v31 = vpack.c.bf16 %v1123_v42, %v1123_v42  ;;  %v1190_v44 = vsel %vm927_vm9, %v1123_v42, 0.0  ;;  %v1217_v55 = vmul.f32 %v1123_v42, %v1123_v42 }
 0x1b2   : > { %v1191_v48 = vadd.f32 %v1190_v44, %v1189_v41 }
 0x1b3   : > { %1164 = vst.msk [vmem:[%s2175_s6 + $0x2c] sm:$0xf] %vm1152_vm2, %v1147_v31  ;;  %v1243_v33 = vsel %vm927_vm9, %v1217_v55, 0.0 }
 0x1b4   : > { %v1193_v35 = vadd.f32 %v1192_v39, %v1191_v48  ;;  %v1244_v51 = vadd.f32 %v1243_v33, %v1242_v47 }
 0x1b6   : > { %v1246_v56 = vadd.f32 %v1245_v52, %v1244_v51  ;;  %v1195_v59 = vadd.f32 %v1194_v0, %v1193_v35 }
 0x1b8   : > { %v1248_v46 = vadd.f32 %v1247_v49, %v1246_v56 }
 0x1bf   : > { %v1131_v54 = vpop.f32.mrf.mxu3 }
 0x1c0   : > { %v1150_v57 = vpack.c.bf16 %v1131_v54, %v1131_v54  ;;  %v1220_v62 = vmul.f32 %v1131_v54, %v1131_v54  ;;  %v1196_v23 = vsel %vm927_vm9, %v1131_v54, 0.0 }
 0x1c1   : > { %v1197_v2 = vadd.f32 %v1196_v23, %v1195_v59 }
 0x1c2   : > { %1167 = vst.msk [vmem:[%s2175_s6 + $0x38] sm:$0xf] %vm1152_vm2, %v1150_v57  ;;  %v1249_v61 = vsel %vm927_vm9, %v1220_v62, 0.0 }
 0x1c3   : > { %v1250_v24 = vadd.f32 %v1249_v61, %v1248_v46 }
 0x1c7   : > { %v1133_v36 = vpop.f32.mrf.mxu3 }
 0x1c8   : > { %v1151_v3 = vpack.c.bf16 %v1133_v36, %v1133_v36  ;;  %v1198_v4 = vsel %vm927_vm9, %v1133_v36, 0.0  ;;  %v1221_v7 = vmul.f32 %v1133_v36, %v1133_v36 }
 0x1c9   : > { %v1199_v9 = vadd.f32 %v1198_v4, %v1197_v2 }
 0x1ca   : > { %1168 = vst.msk [vmem:[%s2175_s6 + $0x3c] sm:$0xf] %vm1152_vm2, %v1151_v3  ;;  %v1251_v45 = vsel %vm927_vm9, %v1221_v7, 0.0 }
 0x1cb   : > { %v1200_v10 = vrot.slane %v1199_v9, 4  ;;  %v1252_v12 = vadd.f32 %v1251_v45, %v1250_v24 }
 0x1cd   : > { %v1201_v11 = vadd.f32 %v1200_v10, %v1199_v9  ;;  %v1253_v63 = vrot.slane %v1252_v12, 4 }
 0x1cf   : > { %v1202_v25 = vrot.slane %v1201_v11, 2  ;;  %v1254_v16 = vadd.f32 %v1253_v63, %v1252_v12 }
 0x1d1   : > { %v1203_v17 = vadd.f32 %v1202_v25, %v1201_v11  ;;  %v1255_v19 = vrot.slane %v1254_v16, 2 }
 0x1d3   : > { %v1204_v18 = vrot.slane %v1203_v17, 1  ;;  %v1256_v20 = vadd.f32 %v1255_v19, %v1254_v16 }
 0x1d5   : > { %v1257_v21 = vrot.slane %v1256_v20, 1  ;;  %v1205_v60 = vadd.f32 %v1204_v18, %v1203_v17 }
 0x1d7   : > { %v1258_v14 = vadd.f32 %v1257_v21, %v1256_v20 }
 0x1d9   : > { %v1260_v13 = vsel %vm587_vm0, %v1205_v60, %v1258_v14 }
 0x1da   : > { %1262 = vst.msk [vmem:[%s413_s12] sm:$0x3] %vm1261_vm3, %v1260_v13 }
 0x1db PF: > { %s16_s22 = sadd.s32 1, %s1652_s22   ;;  %s2276_s18 = smov %s1644_s20 }
 0x1dc   : > { %p13_p12 = scmp.ge.s32.totalorder %s16_s22, 6   ;;  %s2277_s19 = smov %s1648_s21 }
 0x1dd   : > { %s2278_s20 = smov %s2281_s23  ;;  %s2279_s21 = smov %s2285_s24 }
 0x1de   :  { %15 = sbr.rel (!%p13_p12) target bundleno = 3 (0x3), region = 84 }

// kernel: conv_module_forward.4
= control target key start
LH: loop header
LB: loop body
LE: loop exit
PB: predicated region body
PF: predicated region fallthrough
CT: control target
= control target key end

     0   :  { %s1925_s24 = smov 0   ;;  %s1927_s25 = smov 0   ;;  %s2585_s0 = inlined_call_operand.vmem [shape: bf16[2,16,16,8], index: 0, kind: input, shape index: {}, may-alias: {0,1,2}]   ;;  %s2586_s1 = inlined_call_operand.vmem [shape: bf16[2,16,16,8], index: 1, kind: input, shape index: {}, may-alias: {0,1,2}]   ;;  %s2587_s2 = inlined_call_operand.vmem [shape: bf16[2,16,16,8], index: 2, kind: input, shape index: {}, may-alias: {0,1,2}]   ;;  %s2588_s3 = inlined_call_operand.vmem [shape: bf16[72,8], index: 3, kind: input, shape index: {}]   ;;  %s2589_s4 = inlined_call_operand.vmem [shape: f32[1,8], index: 4, kind: input, shape index: {}]   ;;  %s2590_s5 = inlined_call_operand.vmem [shape: f32[1,8], index: 5, kind: input, shape index: {}]   ;;  %s2591_s6 = inlined_call_operand.vmem [shape: bf16[2,16,16,8], index: 6, kind: output, shape index: {0}]   ;;  %s2592_s7 = inlined_call_operand.vmem [shape: f32[2,2,2,8], index: 7, kind: output, shape index: {1}]  }
   0x1   :  { %s1929_s26 = smov 0   ;;  %s1931_s27 = smov 0  }
   0x2   :  { %s1933_s28 = smov 0  }
   0x3 LB: > { %s27_s29 = sadd.s32 1, %s1867_s26  ;;  %s30_s30 = sadd.s32 1, %s1871_s27  ;;  %s1875_s28 = sphi %s1933_s28, %s18_s28   ;;  %s1871_s27 = sphi %s1931_s27, %s2601_s27   ;;  %s1867_s26 = sphi %s1929_s26, %s2600_s26   ;;  %s1863_s25 = sphi %s1927_s25, %s2599_s25   ;;  %s1859_s24 = sphi %s1925_s24, %s2598_s24  }
   0x4   : > { %p28_p0 = scmp.ge.s32.totalorder %s27_s29, 2  ;;  %p1659_p1 = scmp.ge.s32.totalorder %s1875_s28, 1 }
   0x5   : > { %p328_p2 = scmp.lt.s32.totalorder %s1875_s28, 5 }
   0x6   : > { %s2603_s29 = smov (%p28_p0, %s27_s29), 0  ;;  %s2605_s30 = smov (!%p28_p0, %s30_s30), %s1871_s27 }
   0x7   : > { %p329_p3 = pnand %p1659_p1, %p328_p2  ;;  %p32_p4 = scmp.ge.s32.totalorder %s2605_s30, 2 }
   0x8   : > { %s1958_s8 = sshll.u32 (!%p329_p3), %s1859_s24, 3  ;;  %p405_p5 = scmp.lt.s32.totalorder (!%p329_p3), %s1863_s25, 1 }
   0x9   : > { %s2607_s30 = smov (%p32_p4, %s2605_s30), 0  ;;  %332 = sbr.rel (%p329_p3) target bundleno = 493 (0x1ed), region = 44 }
   0xa   : > { %p407_p6 = scmp.lt.s32.totalorder (!%p329_p3), %s1958_s8, 15  ;;  %s1665_s21 = sadd.s32 (!%p329_p3), 4294967295, %s1958_s8 }
   0xb   : > { %p417_p7 = scmp.gt.s32.totalorder (!%p329_p3), %s1665_s21, 0  ;;  %p1666_p8 = scmp.lt.s32.totalorder (!%p329_p3), %s1665_s21, 15 }
   0xc   : > { %s1877_s18 = smov (!%p329_p3), 48   ;;  %s1878_s19 = smov (!%p329_p3), 24  }
   0xd   : > { %p617_p9 = scmp.gt.s32.totalorder (!%p329_p3), %s1859_s24, 0  ;;  %s1879_s20 = smov (!%p329_p3), 16  }
   0xe   : > { %s2609_s25 = smov (!%p405_p5, %s1863_s25), 1  ;;  %v1981_v0 = vld [vmem:[%s2589_s4] ss:$0 sm:$0xff]  ;;  %vm769_vm0 = vcmask 1040384   ;;  %vm770_vm1 = vsmask.f32 256 }
   0xf   : > { %s408_s9 = scalar_select %p407_p6, %s1958_s8, 15  ;;  %v1989_v6 = vld [vmem:[%s2590_s5] ss:$0 sm:$0xff]  ;;  %vm2021_vm2 = vmand %vm769_vm0, %vm770_vm1  ;;  %vm921_vm3 = vcmask 1046528   ;;  %vm792_vm4 = vsmask.f32 7424 }
  0x10   : > { %s1965_s10 = sshll.u32 %s2609_s25, 5  ;;  %s1881_s14 = smov 32   ;;  %vm1281_vm6 = vcmask 1043456   ;;  %vm1092_vm8 = vcmask 64512   ;;  %vm1109_vm9 = vcmask 130048   ;;  %vm1126_vm10 = vcmask 195584  }
  0x11   : > { %s1661_s11 = sshll.u32 %s408_s9, 1  ;;  %s1882_s15 = smov 40   ;;  %vm1143_vm11 = vcmask 261120   ;;  %vm1160_vm12 = vcmask 326656   ;;  %vm1177_vm13 = vcmask 392192   ;;  %vm1194_vm14 = vcmask 457728  }
  0x12   : > { %s1968_s12 = sadd.s32 %s1965_s10, %s1661_s11  ;;  %p462_p11 = scmp.lt.s32.totalorder %s1859_s24, 1  ;;  %vm1211_vm15 = vcmask 523264   ;;  %vm1264_vm1 = vcmask 588800  }
  0x13   : > { %s2593_s13 = sshll.u32 %s1968_s12, 2 }
  0x14   : > { %s1976_s16 = scalar_lea.vmem %s2585_s0, %s2593_s13  ;;  %s2617_s24 = smov (!%p462_p11, %s1859_s24), 1 }
  0x15   : > { %v1765_v1 = vld [vmem:[%s1976_s16 + $0x8] sm:$0xff]   ;;  %v1726_v2 = vld [vmem:[%s1976_s16] sm:$0xff]   ;;  %v1766_v3 = vld [vmem:[%s1976_s16 + $0x10] sm:$0xff]   ;;  %s418_s22 = scalar_select %p417_p7, %s1665_s21, 0 }
  0x16   : > { %v1731_v4 = vunpack.c.l.bf16 %v1765_v1  ;;  %v1732_v5 = vunpack.c.h.bf16 %v1765_v1  ;;  %v1727_v7 = vunpack.c.l.bf16 %v1726_v2  ;;  %v1728_v8 = vunpack.c.h.bf16 %v1726_v2  ;;  %v1767_v9 = vld [vmem:[%s1976_s16 + $0x18] sm:$0xff]   ;;  %v1768_v22 = vld [vmem:[%s1976_s16 + $0x20] sm:$0xff]   ;;  %s2073_s21 = scalar_select %p617_p9, 1, 0 }
  0x17   : > { %v1735_v10 = vunpack.c.l.bf16 %v1766_v3  ;;  %v1736_v11 = vunpack.c.h.bf16 %v1766_v3  ;;  %v1739_v12 = vunpack.c.l.bf16 %v1767_v9  ;;  %v1740_v13 = vunpack.c.h.bf16 %v1767_v9  ;;  %s2611_s22 = smov (!%p1666_p8, %s418_s22), 15 }
  0x18   : > { %v507_v14 = vmul.f32 %v1981_v0, %v1731_v4  ;;  %v508_v15 = vmul.f32 %v1981_v0, %v1732_v5  ;;  %v505_v16 = vmul.f32 %v1981_v0, %v1727_v7  ;;  %v506_v17 = vmul.f32 %v1981_v0, %v1728_v8  ;;  %s1671_s23 = sshll.u32 %s2611_s22, 1  ;;  %s1720_s22 = sadd.s32 8, %s1958_s8 }
  0x19   : > { %v509_v18 = vmul.f32 %v1981_v0, %v1735_v10  ;;  %v510_v19 = vmul.f32 %v1981_v0, %v1736_v11  ;;  %v511_v20 = vmul.f32 %v1981_v0, %v1739_v12  ;;  %v512_v21 = vmul.f32 %v1981_v0, %v1740_v13  ;;  %s425_s9 = sadd.s32 %s1671_s23, %s1965_s10  ;;  %p2079_p10 = scmp.lt.s32.totalorder %s1720_s22, 15 }
  0x1a   : > { %v527_v23 = vadd.f32 %v1989_v6, %v507_v14  ;;  %v528_v24 = vadd.f32 %v1989_v6, %v508_v15  ;;  %v525_v25 = vadd.f32 %v1989_v6, %v505_v16  ;;  %v526_v26 = vadd.f32 %v1989_v6, %v506_v17  ;;  %s1673_s11 = sshll.u32 %s425_s9, 2  ;;  %s1880_s8 = smov 64  }
  0x1b   : > { %v529_v27 = vadd.f32 %v1989_v6, %v509_v18  ;;  %v530_v28 = vadd.f32 %v1989_v6, %v510_v19  ;;  %v531_v29 = vadd.f32 %v1989_v6, %v511_v20  ;;  %v532_v30 = vadd.f32 %v1989_v6, %v512_v21  ;;  %s427_s17 = scalar_lea.vmem %s2586_s1, %s1673_s11  ;;  %s2613_s22 = smov (!%p2079_p10, %s1720_s22), 15 }
  0x1c   : > { %v543_v31 = vmul.f32 0.1, %v527_v23  ;;  %v544_v32 = vmul.f32 0.1, %v528_v24  ;;  %v541_v33 = vmul.f32 0.1, %v525_v25  ;;  %v1743_v34 = vunpack.c.l.bf16 %v1768_v22 }
  0x1d   : > { %v542_v35 = vmul.f32 0.1, %v526_v26  ;;  %v545_v36 = vmul.f32 0.1, %v529_v27  ;;  %v546_v37 = vmul.f32 0.1, %v530_v28  ;;  %v1744_v38 = vunpack.c.h.bf16 %v1768_v22 }
  0x1e   : > { %v559_v39 = vmax.f32 %v527_v23, %v543_v31  ;;  %v560_v40 = vmax.f32 %v528_v24, %v544_v32  ;;  %v557_v41 = vmax.f32 %v525_v25, %v541_v33  ;;  %v547_v42 = vmul.f32 0.1, %v531_v29  ;;  %s2615_s22 = smov (!%p2079_p10, %s2613_s22), 15 }
  0x1f   : > { %v558_v43 = vmax.f32 %v526_v26, %v542_v35  ;;  %v561_v44 = vmax.f32 %v529_v27, %v545_v36  ;;  %v562_v45 = vmax.f32 %v530_v28, %v546_v37  ;;  %v548_v46 = vmul.f32 0.1, %v532_v30  ;;  %v1758_v36 = vld [vmem:[%s427_s17] sm:$0xff]   ;;  %s2116_s9 = sshll.u32 %s2615_s22, 1  ;;  %s1883_s17 = smov 8  }
  0x20   : > { %v575_v47 = vpack.c.bf16 %v559_v39, %v559_v39  ;;  %v576_v48 = vpack.c.bf16 %v560_v40, %v560_v40  ;;  %v573_v49 = vpack.c.bf16 %v557_v41, %v557_v41  ;;  %v563_v50 = vmax.f32 %v531_v29, %v547_v42  ;;  %s442_s11 = sadd.s32 %s2116_s9, %s1965_s10 }
  0x21   : > { %v574_v51 = vpack.c.bf16 %v558_v43, %v558_v43  ;;  %v577_v52 = vpack.c.bf16 %v561_v44, %v561_v44  ;;  %v578_v53 = vpack.c.bf16 %v562_v45, %v562_v45  ;;  %v564_v54 = vmax.f32 %v532_v30, %v548_v46 }
  0x22   : > { %v653_v55 = vunpack.c.l.b16 %v575_v47  ;;  %v654_v56 = vunpack.c.l.b16 %v576_v48  ;;  %v651_v57 = vunpack.c.l.b16 %v573_v49  ;;  %v579_v58 = vpack.c.bf16 %v563_v50, %v563_v50 }
  0x23   : > { %v652_v59 = vunpack.c.l.b16 %v574_v51  ;;  %v655_v60 = vunpack.c.l.b16 %v577_v52  ;;  %v656_v61 = vunpack.c.l.b16 %v578_v53  ;;  %v580_v62 = vpack.c.bf16 %v564_v54, %v564_v54 }
  0x24   : > { %v671_v63 = vpack.c.b16 %v654_v56, %v653_v55  ;;  %v657_v1 = vunpack.c.l.b16 %v579_v58  ;;  %v513_v2 = vmul.f32 %v1981_v0, %v1743_v34  ;;  %v514_v3 = vmul.f32 %v1981_v0, %v1744_v38 }
  0x25   : > { %v670_v4 = vpack.c.b16 %v652_v59, %v651_v57  ;;  %v672_v5 = vpack.c.b16 %v656_v61, %v655_v60  ;;  %v658_v7 = vunpack.c.l.b16 %v580_v62  ;;  %v1759_v47 = vunpack.c.l.bf16 %v1758_v36 }
  0x26   : > { %v694_v8 = vshrl.u32 %v671_v63, 16  ;;  %v697_v9 = vshll.u32 %v671_v63, 16  ;;  %v533_v10 = vadd.f32 %v1989_v6, %v513_v2  ;;  %v534_v11 = vadd.f32 %v1989_v6, %v514_v3 }
  0x27   : > { %v687_v13 = vshrl.u32 %v670_v4, 16  ;;  %v690_v14 = vshll.u32 %v670_v4, 16  ;;  %v701_v15 = vshrl.u32 %v672_v5, 16  ;;  %v673_v17 = vpack.c.b16 %v658_v7, %v657_v1 }
  0x28   : > { %v696_v16 = vrot.slane %v694_v8, 7  ;;  %v549_v18 = vmul.f32 0.1, %v533_v10  ;;  %v550_v19 = vmul.f32 0.1, %v534_v11  ;;  %v704_v22 = vshll.u32 %v672_v5, 16 }
  0x29   : > { %v689_v20 = vrot.slane %v687_v13, 7  ;;  %v703_v21 = vrot.slane %v701_v15, 7  ;;  %v708_v25 = vshrl.u32 %v673_v17, 16  ;;  %v711_v26 = vshll.u32 %v673_v17, 16 }
  0x2a   : > { %v699_v23 = vor.u32 %v697_v9, %v696_v16  ;;  %v2027_v24 = vsel %vm2021_vm2, %v696_v16, 0  ;;  %v565_v29 = vmax.f32 %v533_v10, %v549_v18  ;;  %v566_v32 = vmax.f32 %v534_v11, %v550_v19 }
  0x2b   : > { %v692_v27 = vor.u32 %v690_v14, %v689_v20  ;;  %v929_v28 = vrot.slane %v2027_v24, 1  ;;  %v710_v31 = vrot.slane %v708_v25, 7  ;;  %v706_v37 = vor.u32 %v704_v22, %v703_v21 }
  0x2c   : > { %v2035_v30 = vsel %vm2021_vm2, 0, %v699_v23  ;;  %v581_v35 = vpack.c.bf16 %v565_v29, %v565_v29  ;;  %v582_v40 = vpack.c.bf16 %v566_v32, %v566_v32  ;;  %v2063_v46 = vsel %vm2021_vm2, %v689_v20, 0  ;;  %v1769_v23 = vld [vmem:[%s1976_s16 + $0x28] sm:$0xff]  }
  0x2d   : > { %1028 = vrot.lane.b32.xlu2 %v2035_v30, %s1877_s18  ;;  %v2041_v33 = vsel %vm2021_vm2, 0, %v692_v27  ;;  %v928_v34 = vrot.slane %v2035_v30, 1  ;;  %v713_v38 = vor.u32 %v711_v26, %v710_v31  ;;  %v2048_v39 = vsel %vm2021_vm2, %v710_v31, 0 }
  0x2e   : > { %963 = vrot.lane.b32.xlu1 %v2041_v33, %s1878_s19  ;;  %v659_v42 = vunpack.c.l.b16 %v581_v35  ;;  %v808_v43 = vshll.u32 %v2041_v33, 16  ;;  %v660_v45 = vunpack.c.l.b16 %v582_v40  ;;  %v935_v49 = vrot.slane %v2048_v39, 1 }
  0x2f   : > { %v2052_v41 = vsel %vm921_vm3, %v928_v34, %v929_v28  ;;  %v2059_v44 = vsel %vm2021_vm2, 0, %v713_v38  ;;  %v1760_v50 = vunpack.c.h.bf16 %v1758_v36  ;;  %v2069_v51 = vsel %vm2021_vm2, 0, %v706_v37 }
  0x30   : > { %950 = vrot.lane.b32.xlu0 %v2052_v41, %s1879_s20  ;;  %v934_v48 = vrot.slane %v2059_v44, 1  ;;  %v674_v52 = vpack.c.b16 %v660_v45, %v659_v42  ;;  %v806_v53 = vshrl.u32 %v2041_v33, 16  ;;  %v810_v54 = vrot.slane %v808_v43, 1 }
  0x31   : > { %v813_v55 = vshll.u32 %v2063_v46, 16  ;;  %v593_v58 = vmul.f32 %v1981_v0, %v1759_v47  ;;  %v594_v60 = vmul.f32 %v1981_v0, %v1760_v50  ;;  %v2095_v62 = vsel %vm2021_vm2, %v703_v21, 0 }
  0x32   : > { %v715_v56 = vshrl.u32 %v674_v52, 16  ;;  %v718_v57 = vshll.u32 %v674_v52, 16  ;;  %v2086_v59 = vsel %vm921_vm3, %v934_v48, %v935_v49  ;;  %v811_v1 = vor.u32 %v810_v54, %v806_v53 }
  0x33   : > { %v595_v63 = vadd.f32 %v1989_v6, %v593_v58  ;;  %v815_v2 = vrot.slane %v813_v55, 1  ;;  %v844_v3 = vshll.u32 %v2059_v44, 16  ;;  %v596_v4 = vadd.f32 %v1989_v6, %v594_v60 }
  0x34   : > { %v2091_v61 = vrot.slane %v715_v56, 7  ;;  %v619_v8 = vstv %s2073_s21  ;;  %v931_v9 = vrot.slane %v2069_v51, 1  ;;  %v932_v10 = vrot.slane %v2095_v62, 1  ;;  %s1884_s21 = smov 56  }
  0x35   : > { %967 = vrot.lane.b32.xlu2 %v2069_v51, %s1878_s19  ;;  %v597_v7 = vmul.f32 0.1, %v595_v63  ;;  %v598_v11 = vmul.f32 0.1, %v596_v4  ;;  %v842_v14 = vshrl.u32 %v2059_v44, 16  ;;  %v849_v15 = vshll.u32 %v2048_v39, 16 }
  0x36   : > { %1076 = vrot.lane.b32.xlu1 %v2052_v41, %s1880_s8  ;;  %v720_v5 = vor.u32 %v718_v57, %v2091_v61  ;;  %v2119_v17 = vsel %vm792_vm4, %v811_v1, %v815_v2  ;;  %v846_v18 = vrot.slane %v844_v3, 1  ;;  %vm620_vm5 = vcmp.eq.s32.totalorder %v619_v8, 1 }
  0x37   : > { %v599_v16 = vmax.f32 %v595_v63, %v597_v7  ;;  %v600_v19 = vmax.f32 %v596_v4, %v598_v11  ;;  %v2126_v21 = vsel %vm921_vm3, %v931_v9, %v932_v10  ;;  %v851_v25 = vrot.slane %v849_v15, 1 }
  0x38   : > { %954 = vrot.lane.b32.xlu0 %v2086_v59, %s1879_s20  ;;  %v2112_v13 = vsel %vm2021_vm2, 0, %v720_v5  ;;  %v847_v27 = vor.u32 %v846_v18, %v842_v14  ;;  %v832_v31 = vshll.u32 %v2069_v51, 16  ;;  %v1747_v34 = vunpack.c.l.bf16 %v1769_v23 }
  0x39   : > { %v601_v20 = vpack.c.bf16 %v599_v16, %v599_v16  ;;  %v602_v22 = vpack.c.bf16 %v600_v19, %v600_v19  ;;  %v925_v35 = vrot.slane %v2041_v33, 1  ;;  %v1748_v36 = vunpack.c.h.bf16 %v1769_v23 }
  0x3a   : > { %v926_v38 = vrot.slane %v2063_v46, 1  ;;  %v830_v39 = vshrl.u32 %v2069_v51, 16  ;;  %v515_v40 = vmul.f32 %v1981_v0, %v1747_v34  ;;  %v2139_v42 = vsel %vm792_vm4, %v847_v27, %v851_v25 }
  0x3b   : > { %v621_v26 = vsel %vm620_vm5, %v601_v20, 0  ;;  %v622_v28 = vsel %vm620_vm5, %v602_v22, 0  ;;  %v834_v43 = vrot.slane %v832_v31, 1  ;;  %v837_v45 = vshll.u32 %v2095_v62, 16 }
  0x3c   : > { %v649_v29 = vunpack.c.l.b16 %v621_v26  ;;  %v650_v32 = vunpack.c.l.b16 %v622_v28  ;;  %v516_v47 = vmul.f32 %v1981_v0, %v1748_v36  ;;  %v535_v50 = vadd.f32 %v1989_v6, %v515_v40  ;;  %v1770_v26 = vld [vmem:[%s1976_s16 + $0x30] sm:$0xff]  }
  0x3d   : > { %971 = vrot.lane.b32.xlu2 %v2112_v13, %s1878_s19  ;;  %v2150_v53 = vsel %vm921_vm3, %v925_v35, %v926_v38  ;;  %v820_v54 = vshll.u32 %v2035_v30, 16  ;;  %v835_v56 = vor.u32 %v834_v43, %v830_v39  ;;  %v839_v57 = vrot.slane %v837_v45, 1 }
  0x3e   : > { %991 = vrot.lane.b32.xlu1 %v2119_v17, %s1881_s14  ;;  %v669_v37 = vpack.c.b16 %v650_v32, %v649_v29  ;;  %v536_v46 = vadd.f32 %v1989_v6, %v516_v47  ;;  %v551_v55 = vmul.f32 0.1, %v535_v50  ;;  %v856_v58 = vshll.u32 %v2112_v13, 16 }
  0x3f   : > { %v2159_v1 = vsel %vm2021_vm2, %v2091_v61, 0  ;;  %v818_v4 = vshrl.u32 %v2035_v30, 16  ;;  %v825_v5 = vshll.u32 %v2027_v24, 16  ;;  %v822_v9 = vrot.slane %v820_v54, 1 }
  0x40   : > { %1015 = vrot.lane.b32.xlu0 %v2126_v21, %s1882_s15  ;;  %v680_v48 = vshrl.u32 %v669_v37, 16  ;;  %v683_v49 = vshll.u32 %v669_v37, 16  ;;  %v552_v60 = vmul.f32 0.1, %v536_v46  ;;  %v567_v2 = vmax.f32 %v535_v50, %v551_v55 }
  0x41   : > { %v854_v10 = vshrl.u32 %v2112_v13, 16  ;;  %v2170_v61 = vsel %vm792_vm4, %v835_v56, %v839_v57  ;;  %v858_v15 = vrot.slane %v856_v58, 1  ;;  %v861_v16 = vshll.u32 %v2159_v1, 16 }
  0x42   : > { %v682_v52 = vrot.slane %v680_v48, 7  ;;  %v568_v7 = vmax.f32 %v536_v46, %v552_v60  ;;  %v583_v11 = vpack.c.bf16 %v567_v2, %v567_v2  ;;  %v823_v20 = vor.u32 %v822_v9, %v818_v4  ;;  %v1771_v9 = vld [vmem:[%s1976_s16 + $0x38] sm:$0xff]   ;;  %s1680_s16 = sshll.u32 %s442_s11, 2 }
  0x43   : > { %v827_v22 = vrot.slane %v825_v5, 1  ;;  %v859_v27 = vor.u32 %v858_v15, %v854_v10  ;;  %v863_v28 = vrot.slane %v861_v16, 1  ;;  %v1751_v29 = vunpack.c.l.bf16 %v1770_v26  ;;  %s444_s13 = scalar_lea.vmem %s2587_s2, %s1680_s16 }
  0x44   : > { %v685_v62 = vor.u32 %v683_v49, %v682_v52  ;;  %v782_v63 = vsel %vm2021_vm2, %v682_v52, 0  ;;  %v584_v18 = vpack.c.bf16 %v568_v7, %v568_v7  ;;  %v661_v24 = vunpack.c.l.b16 %v583_v11 }
  0x45   : > { %1032 = vrot.lane.b32.xlu2 %v2059_v44, %s1877_s18  ;;  %v923_v3 = vrot.slane %v782_v63, 1  ;;  %v1752_v31 = vunpack.c.h.bf16 %v1770_v26  ;;  %v801_v34 = vshll.u32 %v782_v63, 16  ;;  %v517_v35 = vmul.f32 %v1981_v0, %v1751_v29 }
  0x46   : > { %897 = vrot.lane.b32.xlu1 %v2139_v42, %s1883_s17  ;;  %v2165_v8 = vsel %vm2021_vm2, 0, %v685_v62  ;;  %v662_v25 = vunpack.c.l.b16 %v584_v18  ;;  %v2185_v43 = vsel %vm792_vm4, %v823_v20, %v827_v22  ;;  %v2188_v45 = vsel %vm792_vm4, %v859_v27, %v863_v28 }
  0x47   : > { %v922_v14 = vrot.slane %v2165_v8, 1  ;;  %v796_v23 = vshll.u32 %v2165_v8, 16  ;;  %v518_v36 = vmul.f32 %v1981_v0, %v1752_v31  ;;  %v794_v37 = vshrl.u32 %v2165_v8, 16 }
  0x48   : > { %v675_v32 = vpack.c.b16 %v662_v25, %v661_v24  ;;  %v537_v47 = vadd.f32 %v1989_v6, %v517_v35  ;;  %v803_v46 = vrot.slane %v801_v34, 1  ;;  %v937_v10 = vrot.slane %v2112_v13, 1 }
  0x49   : > { %v924_v19 = vsel %vm921_vm3, %v922_v14, %v923_v3  ;;  %v798_v38 = vrot.slane %v796_v23, 1  ;;  %v538_v48 = vadd.f32 %v1989_v6, %v518_v36  ;;  %v938_v11 = vrot.slane %v2159_v1, 1 }
  0x4a   : > { %946 = vrot.lane.b32.xlu0 %v924_v19, %s1879_s20  ;;  %v722_v39 = vshrl.u32 %v675_v32, 16  ;;  %v725_v40 = vshll.u32 %v675_v32, 16  ;;  %v553_v54 = vmul.f32 0.1, %v537_v47  ;;  %v1755_v16 = vunpack.c.l.bf16 %v1771_v9 }
  0x4b   : > { %v799_v50 = vor.u32 %v798_v38, %v794_v37  ;;  %v554_v55 = vmul.f32 0.1, %v538_v48  ;;  %v1756_v18 = vunpack.c.h.bf16 %v1771_v9  ;;  %v2219_v19 = vsel %vm921_vm3, %v937_v10, %v938_v11 }
  0x4c   : > { %v724_v49 = vrot.slane %v722_v39, 7  ;;  %v569_v62 = vmax.f32 %v537_v47, %v553_v54  ;;  %v519_v23 = vmul.f32 %v1981_v0, %v1755_v16 }
  0x4d   : > { %1011 = vrot.lane.b32.xlu2 %v2150_v53, %s1882_s15  ;;  %v804_v58 = vsel %vm792_vm4, %v799_v50, %v803_v46  ;;  %v570_v4 = vmax.f32 %v538_v48, %v554_v55  ;;  %v520_v25 = vmul.f32 %v1981_v0, %v1756_v18 }
  0x4e   : > { %995 = vrot.lane.b32.xlu1 %v2170_v61, %s1881_s14  ;;  %v727_v52 = vor.u32 %v725_v40, %v724_v49  ;;  %v788_v60 = vsel %vm2021_vm2, %v724_v49, 0  ;;  %v585_v14 = vpack.c.bf16 %v569_v62, %v569_v62  ;;  %v539_v28 = vadd.f32 %v1989_v6, %v519_v23 }
  0x4f   : > { %v873_v3 = vshll.u32 %v788_v60, 16  ;;  %v586_v15 = vpack.c.bf16 %v570_v4, %v570_v4  ;;  %v941_v26 = vrot.slane %v788_v60, 1  ;;  %v540_v29 = vadd.f32 %v1989_v6, %v520_v25 }
  0x50   : > { %v2200_v56 = vsel %vm2021_vm2, 0, %v727_v52  ;;  %v663_v20 = vunpack.c.l.b16 %v585_v14  ;;  %v555_v34 = vmul.f32 0.1, %v539_v28 }
  0x51   : > { %v868_v57 = vshll.u32 %v2200_v56, 16  ;;  %v866_v63 = vshrl.u32 %v2200_v56, 16  ;;  %v875_v7 = vrot.slane %v873_v3, 1  ;;  %v664_v22 = vunpack.c.l.b16 %v586_v15 }
  0x52   : > { %1056 = vrot.lane.b32.xlu0 %v2185_v43, %s1884_s21  ;;  %v940_v1 = vrot.slane %v2200_v56, 1  ;;  %v556_v35 = vmul.f32 0.1, %v540_v29  ;;  %v571_v37 = vmax.f32 %v539_v28, %v555_v34 }
  0x53   : > { %v870_v2 = vrot.slane %v868_v57, 1  ;;  %v676_v27 = vpack.c.b16 %v664_v22, %v663_v20 }
  0x54   : > { %v2233_v31 = vsel %vm921_vm3, %v940_v1, %v941_v26  ;;  %v572_v38 = vmax.f32 %v540_v29, %v556_v35  ;;  %v587_v40 = vpack.c.bf16 %v571_v37, %v571_v37 }
  0x55   : > { %893 = vrot.lane.b32.xlu2 %v2185_v43, %s1883_s17  ;;  %v871_v5 = vor.u32 %v870_v2, %v866_v63  ;;  %v729_v32 = vshrl.u32 %v676_v27, 16  ;;  %v732_v36 = vshll.u32 %v676_v27, 16 }
  0x56   : > { %999 = vrot.lane.b32.xlu1 %v2188_v45, %s1881_s14  ;;  %v588_v47 = vpack.c.bf16 %v572_v38, %v572_v38  ;;  %v665_v49 = vunpack.c.l.b16 %v587_v40 }
  0x57   : > { %v2216_v24 = vsel %vm792_vm4, %v871_v5, %v875_v7 }
  0x58   : > { %v666_v50 = vunpack.c.l.b16 %v588_v47 }
  0x5a   : > { %889 = vrot.lane.b32.xlu0 %v804_v58, %s1883_s17  ;;  %v677_v57 = vpack.c.b16 %v666_v50, %v665_v49 }
  0x5c   : > { %v736_v2 = vshrl.u32 %v677_v57, 16  ;;  %v739_v5 = vshll.u32 %v677_v57, 16 }
  0x5d   : > { %1036 = vrot.lane.b32.xlu2 %v2200_v56, %s1877_s18 }
  0x5e   : > { %1060 = vrot.lane.b32.xlu1 %v2139_v42, %s1884_s21  ;;  %v738_v4 = vrot.slane %v736_v2, 7 }
  0x60   : > { %v790_v11 = vsel %vm2021_vm2, %v738_v4, 0 }
  0x61   : > { %v987_v18 = vshll.u32 %v790_v11, 16  ;;  %v1009_v22 = vrot.slane %v790_v11, 1 }
  0x62   : > { %1019 = vrot.lane.b32.xlu0 %v2219_v19, %s1882_s15 }
  0x63   : > { %v989_v25 = vrot.slane %v987_v18, 1 }
  0x65   : > { %1064 = vrot.lane.b32.xlu2 %v2216_v24, %s1884_s21 }
  0x66   : > { %891 = vrot.lane.b32.xlu1 %v2119_v17, %s1883_s17  ;;  %v731_v17 = vrot.slane %v729_v32, 7  ;;  %v1236_v32 = vld [vmem:[%s2588_s3 + $0x20] sm:$0xf] }
  0x67   : > { %v1254_v34 = vunpack.c.l.b16 %v1236_v32 }
  0x68   : > { %v734_v39 = vor.u32 %v732_v36, %v731_v17  ;;  %v789_v52 = vsel %vm2021_vm2, %v731_v17, 0 }
  0x69   : > { %v885_v55 = vshll.u32 %v789_v52, 16  ;;  %v944_v63 = vrot.slane %v789_v52, 1  ;;  %v1259_v37 = vpack.c.b16 %v1254_v34, %v1254_v34  ;;  %v1724_v52 = vld [vmem:[%s2588_s3 + $0x18] sm:$0xff] }
  0x6a   : > { %1080 = vrot.lane.b32.xlu0 %v2086_v59, %s1880_s8  ;;  %v2249_v48 = vsel %vm2021_vm2, 0, %v734_v39 }
  0x6b   : > { %v880_v46 = vshll.u32 %v2249_v48, 16  ;;  %v878_v54 = vshrl.u32 %v2249_v48, 16  ;;  %v887_v58 = vrot.slane %v885_v55, 1  ;;  %v943_v62 = vrot.slane %v2249_v48, 1 }
  0x6c   : > { %v1283_v40 = vsel %vm1281_vm6, %v1259_v37, 0 }
  0x6d   : > { %901 = vrot.lane.b32.xlu2 %v2216_v24, %s1883_s17  ;;  %v2266_v3 = vsel %vm921_vm3, %v943_v62, %v944_v63  ;;  %1288 = vmatpush.bf16.msra.mxu0 %v1283_v40  ;;  %v1722_v63 = vld [vmem:[%s2588_s3 + $0x8] sm:$0xff] }
  0x6e   : > { %1084 = vrot.lane.b32.xlu1 %v2233_v31, %s1880_s8  ;;  %1772 = vmatpush.bf16.msra.mxu1 %v1283_v40 }
  0x6f   : > { %1773 = vmatpush.bf16.msra.mxu2 %v1283_v40  ;;  %1774 = vmatpush.bf16.msra.mxu3 %v1283_v40 }
  0x71   : > { %1289 = vmatpush.bf16.msra.mxu0 %v1724_v52 }
  0x72   : > { %948 = vrot.lane.b32.xlu0 %v2150_v53, %s1879_s20  ;;  %1775 = vmatpush.bf16.msra.mxu1 %v1724_v52 }
  0x73   : > { %1776 = vmatpush.bf16.msra.mxu2 %v1724_v52  ;;  %1777 = vmatpush.bf16.msra.mxu3 %v1724_v52 }
  0x75   : > { %993 = vrot.lane.b32.xlu2 %v2185_v43, %s1881_s14  ;;  %v882_v43 = vrot.slane %v880_v46, 1 }
  0x76   : > { %958 = vrot.lane.b32.xlu1 %v2233_v31, %s1879_s20 }
  0x77   : > { %v883_v53 = vor.u32 %v882_v43, %v878_v54 }
  0x79   : > { %v2260_v60 = vsel %vm792_vm4, %v883_v53, %v887_v58 }
  0x7a   : > { %965 = vrot.lane.b32.xlu0 %v2035_v30, %s1878_s19 }
  0x7d   : > { %1003 = vrot.lane.b32.xlu2 %v2260_v60, %s1881_s14 }
  0x7e   : > { %1013 = vrot.lane.b32.xlu1 %v2052_v41, %s1882_s15  ;;  %v741_v41 = vor.u32 %v739_v5, %v738_v4 }
  0x80   : > { %v2278_v9 = vsel %vm2021_vm2, 0, %v741_v41 }
  0x81   : > { %v982_v10 = vshll.u32 %v2278_v9, 16  ;;  %v980_v15 = vshrl.u32 %v2278_v9, 16  ;;  %v1008_v20 = vrot.slane %v2278_v9, 1 }
  0x82   : > { %975 = vrot.lane.b32.xlu0 %v2249_v48, %s1878_s19 }
  0x83   : > { %v984_v16 = vrot.slane %v982_v10, 1 }
  0x85   : > { %1058 = vrot.lane.b32.xlu2 %v2170_v61, %s1884_s21  ;;  %v985_v23 = vor.u32 %v984_v16, %v980_v15 }
  0x86   : > { %1023 = vrot.lane.b32.xlu1 %v2266_v3, %s1882_s15 }
  0x87   : > { %v2274_v7 = vpop.permute.xlu2 %1028  ;;  %v2306_v1 = vsel %vm792_vm4, %v985_v23, %v989_v25 }
  0x8a   : > { %1030 = vrot.lane.b32.xlu0 %v2069_v51, %s1877_s18 }
  0x8d   : > { %895 = vrot.lane.b32.xlu2 %v2170_v61, %s1883_s17  ;;  %v2298_v61 = vsel %vm921_vm3, %v1008_v20, %v1009_v22 }
  0x8e   : > { %1078 = vrot.lane.b32.xlu1 %v2126_v21, %s1880_s8 }
  0x8f   : > { %v2289_v14 = vpop.permute.xlu2 %967 }
  0x92   : > { %1040 = vrot.lane.b32.xlu0 %v2278_v9, %s1877_s18 }
  0x95   : > { %1088 = vrot.lane.b32.xlu2 %v2298_v61, %s1880_s8 }
  0x96   : > { %952 = vrot.lane.b32.xlu1 %v2126_v21, %s1879_s20  ;;  %v1762_v21 = vld [vmem:[%s444_s13] sm:$0xff]   ;;  %s624_s13 = scalar_select %p462_p11, 1, 0 }
  0x97   : > { %v2311_v26 = vpop.permute.xlu2 %971  ;;  %v1763_v27 = vunpack.c.l.bf16 %v1762_v21  ;;  %v1764_v28 = vunpack.c.h.bf16 %v1762_v21 }
  0x98   : > { %v625_v55 = vstv %s624_s13 }
  0x99   : > { %v607_v35 = vmul.f32 %v1981_v0, %v1763_v27  ;;  %v608_v17 = vmul.f32 %v1981_v0, %v1764_v28  ;;  %vm626_vm7 = vcmp.eq.s32.totalorder %v625_v55, 1 }
  0x9a   : > { %1068 = vrot.lane.b32.xlu0 %v2306_v1, %s1884_s21 }
  0x9b   : > { %v609_v38 = vadd.f32 %v1989_v6, %v607_v35  ;;  %v610_v39 = vadd.f32 %v1989_v6, %v608_v17 }
  0x9d   : > { %956 = vrot.lane.b32.xlu2 %v2219_v19, %s1879_s20  ;;  %v611_v47 = vmul.f32 0.1, %v609_v38  ;;  %v612_v49 = vmul.f32 0.1, %v610_v39 }
  0x9e   : > { %969 = vrot.lane.b32.xlu1 %v2059_v44, %s1878_s19 }
  0x9f   : > { %v2337_v0 = vpop.permute.xlu2 %1032  ;;  %v613_v50 = vmax.f32 %v609_v38, %v611_v47  ;;  %v614_v46 = vmax.f32 %v610_v39, %v612_v49 }
  0xa0   : > { %v2319_v29 = vpop.permute.xlu1 %963 }
  0xa1   : > { %v615_v54 = vpack.c.bf16 %v613_v50, %v613_v50  ;;  %v616_v43 = vpack.c.bf16 %v614_v46, %v614_v46 }
  0xa2   : > { %v2327_v36 = vpop.permute.xlu0 %950  ;;  %899 = vrot.lane.b32.xlu0 %v2188_v45, %s1883_s17 }
  0xa3   : > { %v627_v53 = vsel %vm626_vm7, %v615_v54, 0  ;;  %v628_v58 = vsel %vm626_vm7, %v616_v43, 0 }
  0xa4   : > { %v667_v2 = vunpack.c.l.b16 %v627_v53  ;;  %v668_v4 = vunpack.c.l.b16 %v628_v58 }
  0xa5   : > { %1017 = vrot.lane.b32.xlu2 %v2086_v59, %s1882_s15  ;;  %v1723_v59 = vld [vmem:[%s2588_s3 + $0x10] sm:$0xff] }
  0xa6   : > { %973 = vrot.lane.b32.xlu1 %v2200_v56, %s1878_s19  ;;  %1290 = vmatpush.bf16.msra.mxu0 %v1723_v59  ;;  %v678_v41 = vpack.c.b16 %v668_v4, %v667_v2 }
  0xa7   : > { %1778 = vmatpush.bf16.msra.mxu1 %v1723_v59  ;;  %1779 = vmatpush.bf16.msra.mxu2 %v1723_v59  ;;  %v2362_v5 = vpop.permute.xlu2 %1011 }
  0xa8   : > { %v2341_v6 = vpop.permute.xlu1 %1076  ;;  %1780 = vmatpush.bf16.msra.mxu3 %v1723_v59  ;;  %v743_v11 = vshrl.u32 %v678_v41, 16  ;;  %v746_v18 = vshll.u32 %v678_v41, 16 }
  0xaa   : > { %v2349_v57 = vpop.permute.xlu0 %954  ;;  %997 = vrot.lane.b32.xlu0 %v2139_v42, %s1881_s14  ;;  %1291 = vmatpush.bf16.msra.mxu0 %v1722_v63  ;;  %v1721_v42 = vld [vmem:[%s2588_s3] sm:$0xff]  ;;  %v745_v16 = vrot.slane %v743_v11, 7 }
  0xab   : > { %1781 = vmatpush.bf16.msra.mxu1 %v1722_v63  ;;  %1782 = vmatpush.bf16.msra.mxu2 %v1722_v63 }
  0xac   : > { %1783 = vmatpush.bf16.msra.mxu3 %v1722_v63  ;;  %v791_v32 = vsel %vm2021_vm2, %v745_v16, 0 }
  0xad   : > { %1021 = vrot.lane.b32.xlu2 %v2233_v31, %s1882_s15  ;;  %v1052_v34 = vshll.u32 %v791_v32, 16  ;;  %v1074_v52 = vrot.slane %v791_v32, 1 }
  0xae   : > { %1034 = vrot.lane.b32.xlu1 %v2112_v13, %s1877_s18  ;;  %1292 = vmatpush.bf16.msra.mxu0 %v1721_v42 }
  0xaf   : > { %1784 = vmatpush.bf16.msra.mxu1 %v1721_v42  ;;  %1785 = vmatpush.bf16.msra.mxu2 %v1721_v42  ;;  %v894_v15 = vpop.permute.xlu2 %893  ;;  %v1054_v37 = vrot.slane %v1052_v34, 1 }
  0xb0   : > { %v2357_v62 = vpop.permute.xlu1 %991  ;;  %1786 = vmatpush.bf16.msra.mxu3 %v1721_v42  ;;  %v1098_v38 = vsel %vm1092_vm8, %v2035_v30, %v894_v15 }
  0xb2   : > { %1001 = vrot.lane.b32.xlu0 %v2216_v24, %s1881_s14  ;;  %v2369_v31 = vpop.permute.xlu0 %1015 }
  0xb5   : > { %1082 = vrot.lane.b32.xlu2 %v2219_v19, %s1880_s8  ;;  %v748_v19 = vor.u32 %v746_v18, %v745_v16 }
  0xb6   : > { %1038 = vrot.lane.b32.xlu1 %v2249_v48, %s1877_s18 }
  0xb7   : > { %v1037_v22 = vpop.permute.xlu2 %1036  ;;  %v781_v23 = vsel %vm2021_vm2, 0, %v748_v19  ;;  %vm1350_vm2 = vcmask 60416  }
  0xb8   : > { %v898_v10 = vpop.permute.xlu1 %897  ;;  %v1047_v25 = vshll.u32 %v781_v23, 16  ;;  %v1045_v27 = vshrl.u32 %v781_v23, 16  ;;  %v1073_v46 = vrot.slane %v781_v23, 1 }
  0xb9   : > { %v1102_v39 = vsel %vm1092_vm8, %v2059_v44, %v898_v10 }
  0xba   : > { %1062 = vrot.lane.b32.xlu0 %v2188_v45, %s1884_s21  ;;  %v1049_v28 = vrot.slane %v1047_v25, 1  ;;  %v1119_v30 = vsel %vm1109_vm9, %v1102_v39, %v2349_v57  ;;  %v1075_v53 = vsel %vm921_vm3, %v1073_v46, %v1074_v52  ;;  %vm1459_vm3 = vcmask 58368  }
  0xbb   : > { %v1136_v54 = vsel %vm1126_vm10, %v1119_v30, %v2311_v26 }
  0xbc   : > { %v947_v24 = vpop.permute.xlu0 %946  ;;  %v1050_v17 = vor.u32 %v1049_v28, %v1045_v27 }
  0xbd   : > { %903 = vrot.lane.b32.xlu2 %v2260_v60, %s1883_s17 }
  0xbe   : > { %1086 = vrot.lane.b32.xlu1 %v2266_v3, %s1880_s8 }
  0xbf   : > { %v1065_v35 = vpop.permute.xlu2 %1064 }
  0xc0   : > { %v996_v20 = vpop.permute.xlu1 %995 }
  0xc2   : > { %1066 = vrot.lane.b32.xlu0 %v2260_v60, %s1884_s21  ;;  %v1055_v60 = vsel %vm792_vm4, %v1050_v17, %v1054_v37 }
  0xc4   : > { %v1057_v45 = vpop.permute.xlu0 %1056 }
  0xc5   : > { %1005 = vrot.lane.b32.xlu2 %v2306_v1, %s1881_s14 }
  0xc6   : > { %977 = vrot.lane.b32.xlu1 %v2278_v9, %s1878_s19 }
  0xc7   : > { %v902_v49 = vpop.permute.xlu2 %901 }
  0xc8   : > { %v1000_v21 = vpop.permute.xlu1 %999 }
  0xca   : > { %960 = vrot.lane.b32.xlu0 %v2266_v3, %s1879_s20 }
  0xcc   : > { %v890_v9 = vpop.permute.xlu0 %889 }
  0xcd   : > { %1070 = vrot.lane.b32.xlu2 %v1055_v60, %s1884_s21  ;;  %v1094_v12 = vsel %vm1092_vm8, %v2165_v8, %v890_v9  ;;  %v1115_v8 = vsel %vm1109_vm9, %v1098_v38, %v2327_v36 }
  0xce   : > { %1042 = vrot.lane.b32.xlu1 %v781_v23, %s1877_s18  ;;  %v1111_v3 = vsel %vm1109_vm9, %v1094_v12, %v947_v24  ;;  %v1132_v36 = vsel %vm1126_vm10, %v1115_v8, %v2289_v14  ;;  %s2597_s18 = sshll.u32 %s1968_s12, 2  ;;  %s1685_s12 = sshll.u32 %s2609_s25, 1 }
  0xcf   : > { %v1128_v40 = vsel %vm1126_vm10, %v1111_v3, %v2319_v29  ;;  %v994_v58 = vpop.permute.xlu2 %993  ;;  %s465_s14 = sadd.s32 %s1685_s12, %s2617_s24 }
  0xd0   : > { %v1061_v1 = vpop.permute.xlu1 %1060  ;;  %v1145_v47 = vsel %vm1143_vm11, %v1128_v40, %v2357_v62 }
  0xd1   : > { %v1162_v44 = vsel %vm1160_vm12, %v1145_v47, %v2362_v5 }
  0xd2   : > { %1025 = vrot.lane.b32.xlu0 %v2298_v61, %s1882_s15  ;;  %v1179_v29 = vsel %vm1177_vm13, %v1162_v44, %v2274_v7  ;;  %v1149_v61 = vsel %vm1143_vm11, %v1132_v36, %v996_v20  ;;  %v1153_v7 = vsel %vm1143_vm11, %v1136_v54, %v1000_v21  ;;  %s1686_s15 = sshll.u32 %s465_s14, 1 }
  0xd3   : > { %v1196_v50 = vsel %vm1194_vm14, %v1179_v29, %v1057_v45  ;;  %v1166_v14 = vsel %vm1160_vm12, %v1149_v61, %v2369_v31  ;;  %s467_s16 = scalar_lea.vmem %s2592_s7, %s1686_s15 }
  0xd4   : > { %v1020_v43 = vpop.permute.xlu0 %1019  ;;  %v1213_v55 = vsel %vm1211_vm15, %v1196_v50, %v2341_v6  ;;  %v1183_v6 = vsel %vm1177_vm13, %v1166_v14, %v2337_v0 }
  0xd5   : > { %1703 = vmatmul.msk.bf16.vlgmr.msra.gmra.mxu0 %vm1264_vm1, %v1213_v55  ;;  %v1170_v57 = vsel %vm1160_vm12, %v1153_v7, %v1020_v43  ;;  %v1200_v62 = vsel %vm1194_vm14, %v1183_v6, %v1061_v1 }
  0xd6   : > { %v1187_v26 = vsel %vm1177_vm13, %v1170_v57, %v1037_v22 }
  0xd7   : > { %v1204_v63 = vsel %vm1194_vm14, %v1187_v26, %v1065_v35  ;;  %v1004_v10 = vpop.permute.xlu2 %1003 }
  0xd8   : > { %v892_v59 = vpop.permute.xlu1 %891 }
  0xd9   : > { %v1096_v16 = vsel %vm1092_vm8, %v2041_v33, %v892_v59  ;;  %v1106_v33 = vsel %vm1092_vm8, %v2200_v56, %v902_v49 }
  0xda   : > { %1090 = vrot.lane.b32.xlu0 %v1075_v53, %s1880_s8  ;;  %s2496_s8 = scalar_lea.vmem %s2591_s6, %s2597_s18 }
  0xdc   : > { %v1081_v2 = vpop.permute.xlu0 %1080 }
  0xdd   : > { %v1217_v5 = vsel %vm1211_vm15, %v1200_v62, %v1081_v2 }
  0xde   : > { %1705 = vmatmul.msk.bf16.vlgmr.msra.gmra.mxu1 %vm1264_vm1, %v1217_v5 }
  0xdf   : > { %v1059_v15 = vpop.permute.xlu2 %1058 }
  0xe0   : > { %v1085_v4 = vpop.permute.xlu1 %1084 }
  0xe1   : > { %v1221_v42 = vsel %vm1211_vm15, %v1204_v63, %v1085_v4 }
  0xe2   : > { %1707 = vmatmul.msk.bf16.vlgmr.msra.gmra.mxu2 %vm1264_vm1, %v1221_v42 }
  0xe4   : > { %v949_v41 = vpop.permute.xlu0 %948 }
  0xe5   : > { %v1113_v20 = vsel %vm1109_vm9, %v1096_v16, %v949_v41 }
  0xe7   : > { %v896_v22 = vpop.permute.xlu2 %895 }
  0xe8   : > { %v959_v31 = vpop.permute.xlu1 %958  ;;  %v1100_v50 = vsel %vm1092_vm8, %v2069_v51, %v896_v22 }
  0xe9   : > { %v1123_v37 = vsel %vm1109_vm9, %v1106_v33, %v959_v31 }
  0xec   : > { %v966_v11 = vpop.permute.xlu0 %965 }
  0xed   : > { %v1130_v19 = vsel %vm1126_vm10, %v1113_v20, %v966_v11 }
  0xee   : > { %v1147_v23 = vsel %vm1143_vm11, %v1130_v19, %v994_v58 }
  0xef   : > { %v1089_v34 = vpop.permute.xlu2 %1088 }
  0xf0   : > { %v1014_v0 = vpop.permute.xlu1 %1013 }
  0xf1   : > { %v1164_v25 = vsel %vm1160_vm12, %v1147_v23, %v1014_v0 }
  0xf4   : > { %v976_v18 = vpop.permute.xlu0 %975 }
  0xf5   : > { %v1140_v60 = vsel %vm1126_vm10, %v1123_v37, %v976_v18 }
  0xf6   : > { %v1157_v9 = vsel %vm1143_vm11, %v1140_v60, %v1004_v10 }
  0xf7   : > { %v957_v40 = vpop.permute.xlu2 %956 }
  0xf8   : > { %v1024_v24 = vpop.permute.xlu1 %1023 }
  0xf9   : > { %v1174_v1 = vsel %vm1160_vm12, %v1157_v9, %v1024_v24 }
  0xfc   : > { %v1031_v45 = vpop.permute.xlu0 %1030 }
  0xfd   : > { %v1181_v27 = vsel %vm1177_vm13, %v1164_v25, %v1031_v45 }
  0xfe   : > { %v1198_v28 = vsel %vm1194_vm14, %v1181_v27, %v1059_v15 }
  0xff   : > { %v1018_v30 = vpop.permute.xlu2 %1017 }
 0x100   : > { %v1079_v21 = vpop.permute.xlu1 %1078 }
 0x101   : > { %v1215_v32 = vsel %vm1211_vm15, %v1198_v28, %v1079_v21 }
 0x102   : > { %1704 = vmatmul.msk.bf16.gmra.mxu0 %vm1264_vm1, %v1215_v32 }
 0x104   : > { %v1041_v35 = vpop.permute.xlu0 %1040 }
 0x105   : > { %v1191_v12 = vsel %vm1177_vm13, %v1174_v1, %v1041_v35 }
 0x107   : > { %v1022_v29 = vpop.permute.xlu2 %1021 }
 0x108   : > { %v953_v17 = vpop.permute.xlu1 %952 }
 0x109   : > { %v1117_v52 = vsel %vm1109_vm9, %v1100_v50, %v953_v17 }
 0x10c   : > { %v1069_v38 = vpop.permute.xlu0 %1068 }
 0x10d   : > { %v1208_v3 = vsel %vm1194_vm14, %v1191_v12, %v1069_v38 }
 0x10e   : > { %v1225_v56 = vsel %vm1211_vm15, %v1208_v3, %v1089_v34 }
 0x10f   : > { %1709 = vmatmul.msk.bf16.vlgmr.msra.gmra.mxu3 %vm1264_vm1, %v1225_v56  ;;  %v1083_v61 = vpop.permute.xlu2 %1082 }
 0x110   : > { %v970_v39 = vpop.permute.xlu1 %969 }
 0x111   : > { %v1134_v36 = vsel %vm1126_vm10, %v1117_v52, %v970_v39 }
 0x114   : > { %v900_v47 = vpop.permute.xlu0 %899 }
 0x115   : > { %v1104_v55 = vsel %vm1092_vm8, %v2112_v13, %v900_v47 }
 0x116   : > { %v1121_v51 = vsel %vm1109_vm9, %v1104_v55, %v957_v40 }
 0x117   : > { %v904_v4 = vpop.permute.xlu2 %903 }
 0x118   : > { %v974_v8 = vpop.permute.xlu1 %973  ;;  %v1108_v42 = vsel %vm1092_vm8, %v2249_v48, %v904_v4 }
 0x119   : > { %v1138_v26 = vsel %vm1126_vm10, %v1121_v51, %v974_v8 }
 0x11c   : > { %v998_v44 = vpop.permute.xlu0 %997 }
 0x11d   : > { %v1151_v54 = vsel %vm1143_vm11, %v1134_v36, %v998_v44 }
 0x11e   : > { %v1168_v59 = vsel %vm1160_vm12, %v1151_v54, %v1018_v30 }
 0x11f   : > { %v1006_v11 = vpop.permute.xlu2 %1005 }
 0x120   : > { %v1035_v49 = vpop.permute.xlu1 %1034 }
 0x121   : > { %v1185_v7 = vsel %vm1177_vm13, %v1168_v59, %v1035_v49 }
 0x124   : > { %v1002_v46 = vpop.permute.xlu0 %1001 }
 0x125   : > { %v1155_v6 = vsel %vm1143_vm11, %v1138_v26, %v1002_v46 }
 0x126   : > { %v1172_v13 = vsel %vm1160_vm12, %v1155_v6, %v1022_v29 }
 0x127   : > { %v1071_v19 = vpop.permute.xlu2 %1070 }
 0x128   : > { %v1039_v43 = vpop.permute.xlu1 %1038 }
 0x129   : > { %v1189_v62 = vsel %vm1177_vm13, %v1172_v13, %v1039_v43 }
 0x12c   : > { %v1063_v57 = vpop.permute.xlu0 %1062 }
 0x12d   : > { %v1202_v53 = vsel %vm1194_vm14, %v1185_v7, %v1063_v57 }
 0x12e   : > { %v1219_v14 = vsel %vm1211_vm15, %v1202_v53, %v1083_v61 }
 0x12f   : > { %1706 = vmatmul.msk.bf16.gmra.mxu1 %vm1264_vm1, %v1219_v14 }
 0x130   : > { %v1087_v58 = vpop.permute.xlu1 %1086 }
 0x134   : > { %v1067_v63 = vpop.permute.xlu0 %1066 }
 0x135   : > { %v1206_v2 = vsel %vm1194_vm14, %v1189_v62, %v1067_v63 }
 0x136   : > { %v1223_v5 = vsel %vm1211_vm15, %v1206_v2, %v1087_v58 }
 0x137   : > { %1708 = vmatmul.msk.bf16.gmra.mxu2 %vm1264_vm1, %v1223_v5 }
 0x138   : > { %v978_v31 = vpop.permute.xlu1 %977 }
 0x13c   : > { %v961_v41 = vpop.permute.xlu0 %960 }
 0x13d   : > { %v1125_v10 = vsel %vm1109_vm9, %v1108_v42, %v961_v41 }
 0x13e   : > { %v1142_v0 = vsel %vm1126_vm10, %v1125_v10, %v978_v31 }
 0x13f   : > { %v1159_v16 = vsel %vm1143_vm11, %v1142_v0, %v1006_v11 }
 0x140   : > { %v1043_v24 = vpop.permute.xlu1 %1042 }
 0x144   : > { %v1026_v15 = vpop.permute.xlu0 %1025 }
 0x145   : > { %v1176_v18 = vsel %vm1160_vm12, %v1159_v16, %v1026_v15 }
 0x146   : > { %v1193_v20 = vsel %vm1177_vm13, %v1176_v18, %v1043_v24 }
 0x147   : > { %v1210_v22 = vsel %vm1194_vm14, %v1193_v20, %v1071_v19 }
 0x14c   : > { %v1091_v48 = vpop.permute.xlu0 %1090 }
 0x14d   : > { %v1227_v23 = vsel %vm1211_vm15, %v1210_v22, %v1091_v48 }
 0x14e   : > { %1710 = vmatmul.msk.bf16.gmra.mxu3 %vm1264_vm1, %v1227_v23 }
 0x152   : > { %v1294_v25 = vpop.f32.mrf.mxu0 }
 0x153   : > { %v1334_v45 = vpack.c.bf16 %v1294_v25, %v1294_v25  ;;  %v1404_v21 = vmul.f32 %v1294_v25, %v1294_v25  ;;  %v1367_v28 = vsel %vm1092_vm8, %v1294_v25, 0.0 }
 0x155   : > { %1351 = vst.msk [vmem:[%s2496_s8] sm:$0xf] %vm1350_vm2, %v1334_v45  ;;  %v1420_v60 = vsel %vm1092_vm8, %v1404_v21, 0.0 }
 0x15a   : > { %v1296_v27 = vpop.f32.mrf.mxu0 }
 0x15b   : > { %v1335_v32 = vpack.c.bf16 %v1296_v27, %v1296_v27  ;;  %v1368_v33 = vsel %vm1092_vm8, %v1296_v27, 0.0  ;;  %v1405_v34 = vmul.f32 %v1296_v27, %v1296_v27  ;;  %v1304_v35 = vpop.f32.mrf.mxu1 }
 0x15c   : > { %v1369_v17 = vadd.f32 %v1368_v33, %v1367_v28  ;;  %v1338_v37 = vpack.c.bf16 %v1304_v35, %v1304_v35  ;;  %v1408_v52 = vmul.f32 %v1304_v35, %v1304_v35  ;;  %v1374_v59 = vsel %vm1092_vm8, %v1304_v35, 0.0 }
 0x15d   : > { %1352 = vst.msk [vmem:[%s2496_s8 + $0x4] sm:$0xf] %vm1350_vm2, %v1335_v32  ;;  %v1421_v9 = vsel %vm1092_vm8, %v1405_v34, 0.0 }
 0x15e   : > { %v1422_v1 = vadd.f32 %v1421_v9, %v1420_v60  ;;  %1355 = vst.msk [vmem:[%s2496_s8 + $0x10] sm:$0xf] %vm1350_vm2, %v1338_v37  ;;  %v1427_v53 = vsel %vm1092_vm8, %v1408_v52, 0.0 }
 0x163   : > { %v1306_v39 = vpop.f32.mrf.mxu1 }
 0x164   : > { %v1339_v3 = vpack.c.bf16 %v1306_v39, %v1306_v39  ;;  %v1409_v63 = vmul.f32 %v1306_v39, %v1306_v39  ;;  %v1376_v4 = vsel %vm1092_vm8, %v1306_v39, 0.0 }
 0x165   : > { %v1314_v12 = vpop.f32.mrf.mxu2 }
 0x166   : > { %v1342_v38 = vpack.c.bf16 %v1314_v12, %v1314_v12  ;;  %1356 = vst.msk [vmem:[%s2496_s8 + $0x14] sm:$0xf] %vm1350_vm2, %v1339_v3  ;;  %v1429_v41 = vsel %vm1092_vm8, %v1409_v63, 0.0  ;;  %v1412_v15 = vmul.f32 %v1314_v12, %v1314_v12  ;;  %v1382_v22 = vsel %vm1092_vm8, %v1314_v12, 0.0 }
 0x168   : > { %1359 = vst.msk [vmem:[%s2496_s8 + $0x20] sm:$0xf] %vm1350_vm2, %v1342_v38  ;;  %v1435_v45 = vsel %vm1092_vm8, %v1412_v15, 0.0 }
 0x16d   : > { %v1316_v40 = vpop.f32.mrf.mxu2 }
 0x16e   : > { %v1343_v56 = vpack.c.bf16 %v1316_v40, %v1316_v40  ;;  %v1413_v28 = vmul.f32 %v1316_v40, %v1316_v40  ;;  %v1384_v33 = vsel %vm1092_vm8, %v1316_v40, 0.0 }
 0x170   : > { %1360 = vst.msk [vmem:[%s2496_s8 + $0x24] sm:$0xf] %vm1350_vm2, %v1343_v56 }
 0x17f   : > { %v1299_v47 = vpop.f32.mrf.mxu0 }
 0x180   : > { %v1336_v8 = vpack.c.bf16 %v1299_v47, %v1299_v47  ;;  %v1370_v30 = vsel %vm1092_vm8, %v1299_v47, 0.0  ;;  %v1406_v44 = vmul.f32 %v1299_v47, %v1299_v47 }
 0x181   : > { %v1371_v49 = vadd.f32 %v1370_v30, %v1369_v17  ;;  %v1437_v17 = vsel %vm1092_vm8, %v1413_v28, 0.0 }
 0x182   : > { %1353 = vst.msk [vmem:[%s2496_s8 + $0x8] sm:$0xf] %vm1350_vm2, %v1336_v8  ;;  %v1423_v29 = vsel %vm1092_vm8, %v1406_v44, 0.0 }
 0x183   : > { %v1424_v50 = vadd.f32 %v1423_v29, %v1422_v1 }
 0x187   : > { %v1301_v46 = vpop.f32.mrf.mxu0 }
 0x188   : > { %v1337_v36 = vpack.c.bf16 %v1301_v46, %v1301_v46  ;;  %v1372_v54 = vsel %vm1092_vm8, %v1301_v46, 0.0  ;;  %v1407_v43 = vmul.f32 %v1301_v46, %v1301_v46 }
 0x189   : > { %v1373_v55 = vadd.f32 %v1372_v54, %v1371_v49 }
 0x18a   : > { %1354 = vst.msk [vmem:[%s2496_s8 + $0xc] sm:$0xf] %vm1350_vm2, %v1337_v36  ;;  %v1425_v61 = vsel %vm1092_vm8, %v1407_v43, 0.0 }
 0x18b   : > { %v1375_v7 = vadd.f32 %v1374_v59, %v1373_v55  ;;  %v1426_v57 = vadd.f32 %v1425_v61, %v1424_v50 }
 0x18d   : > { %v1428_v51 = vadd.f32 %v1427_v53, %v1426_v57  ;;  %v1377_v42 = vadd.f32 %v1376_v4, %v1375_v7 }
 0x18f   : > { %v1430_v11 = vadd.f32 %v1429_v41, %v1428_v51 }
 0x192   : > { %v1324_v14 = vpop.f32.mrf.mxu3 }
 0x193   : > { %v1346_v26 = vpack.c.bf16 %v1324_v14, %v1324_v14  ;;  %v1416_v38 = vmul.f32 %v1324_v14, %v1324_v14  ;;  %v1390_v8 = vsel %vm1092_vm8, %v1324_v14, 0.0 }
 0x195   : > { %1363 = vst.msk [vmem:[%s2496_s8 + $0x30] sm:$0xf] %vm1350_vm2, %v1346_v26  ;;  %v1443_v29 = vsel %vm1092_vm8, %v1416_v38, 0.0 }
 0x19a   : > { %v1326_v6 = vpop.f32.mrf.mxu3 }
 0x19b   : > { %v1347_v58 = vpack.c.bf16 %v1326_v6, %v1326_v6  ;;  %v1417_v36 = vmul.f32 %v1326_v6, %v1326_v6  ;;  %v1392_v43 = vsel %vm1092_vm8, %v1326_v6, 0.0 }
 0x19d   : > { %1364 = vst.msk [vmem:[%s2496_s8 + $0x34] sm:$0xf] %vm1350_vm2, %v1347_v58  ;;  %v1445_v61 = vsel %vm1092_vm8, %v1417_v36, 0.0 }
 0x1ac   : > { %v1309_v13 = vpop.f32.mrf.mxu1 }
 0x1ad   : > { %v1340_v62 = vpack.c.bf16 %v1309_v13, %v1309_v13  ;;  %v1410_v2 = vmul.f32 %v1309_v13, %v1309_v13  ;;  %v1378_v5 = vsel %vm1092_vm8, %v1309_v13, 0.0 }
 0x1ae   : > { %v1379_v10 = vadd.f32 %v1378_v5, %v1377_v42 }
 0x1af   : > { %1357 = vst.msk [vmem:[%s2496_s8 + $0x18] sm:$0xf] %vm1350_vm2, %v1340_v62  ;;  %v1431_v31 = vsel %vm1092_vm8, %v1410_v2, 0.0 }
 0x1b0   : > { %v1432_v20 = vadd.f32 %v1431_v31, %v1430_v11 }
 0x1b4   : > { %v1311_v0 = vpop.f32.mrf.mxu1 }
 0x1b5   : > { %v1341_v16 = vpack.c.bf16 %v1311_v0, %v1311_v0  ;;  %v1380_v18 = vsel %vm1092_vm8, %v1311_v0, 0.0  ;;  %v1411_v24 = vmul.f32 %v1311_v0, %v1311_v0 }
 0x1b6   : > { %v1381_v19 = vadd.f32 %v1380_v18, %v1379_v10 }
 0x1b7   : > { %1358 = vst.msk [vmem:[%s2496_s8 + $0x1c] sm:$0xf] %vm1350_vm2, %v1341_v16  ;;  %v1433_v48 = vsel %vm1092_vm8, %v1411_v24, 0.0 }
 0x1b8   : > { %v1383_v23 = vadd.f32 %v1382_v22, %v1381_v19  ;;  %v1434_v25 = vadd.f32 %v1433_v48, %v1432_v20 }
 0x1ba   : > { %v1436_v21 = vadd.f32 %v1435_v45, %v1434_v25  ;;  %v1319_v27 = vpop.f32.mrf.mxu2  ;;  %v1385_v35 = vadd.f32 %v1384_v33, %v1383_v23 }
 0x1bb   : > { %v1344_v32 = vpack.c.bf16 %v1319_v27, %v1319_v27  ;;  %v1414_v34 = vmul.f32 %v1319_v27, %v1319_v27  ;;  %v1386_v37 = vsel %vm1092_vm8, %v1319_v27, 0.0 }
 0x1bc   : > { %v1438_v60 = vadd.f32 %v1437_v17, %v1436_v21  ;;  %v1387_v1 = vadd.f32 %v1386_v37, %v1385_v35 }
 0x1bd   : > { %1361 = vst.msk [vmem:[%s2496_s8 + $0x28] sm:$0xf] %vm1350_vm2, %v1344_v32  ;;  %v1439_v9 = vsel %vm1092_vm8, %v1414_v34, 0.0 }
 0x1be   : > { %v1440_v56 = vadd.f32 %v1439_v9, %v1438_v60 }
 0x1c2   : > { %v1321_v12 = vpop.f32.mrf.mxu2 }
 0x1c3   : > { %v1345_v39 = vpack.c.bf16 %v1321_v12, %v1321_v12  ;;  %v1388_v3 = vsel %vm1092_vm8, %v1321_v12, 0.0  ;;  %v1415_v40 = vmul.f32 %v1321_v12, %v1321_v12 }
 0x1c4   : > { %v1389_v47 = vadd.f32 %v1388_v3, %v1387_v1 }
 0x1c5   : > { %1362 = vst.msk [vmem:[%s2496_s8 + $0x2c] sm:$0xf] %vm1350_vm2, %v1345_v39  ;;  %v1441_v30 = vsel %vm1092_vm8, %v1415_v40, 0.0 }
 0x1c6   : > { %v1391_v44 = vadd.f32 %v1390_v8, %v1389_v47  ;;  %v1442_v49 = vadd.f32 %v1441_v30, %v1440_v56 }
 0x1c8   : > { %v1444_v50 = vadd.f32 %v1443_v29, %v1442_v49  ;;  %v1393_v59 = vadd.f32 %v1392_v43, %v1391_v44 }
 0x1ca   : > { %v1446_v53 = vadd.f32 %v1445_v61, %v1444_v50 }
 0x1d1   : > { %v1329_v46 = vpop.f32.mrf.mxu3 }
 0x1d2   : > { %v1348_v52 = vpack.c.bf16 %v1329_v46, %v1329_v46  ;;  %v1418_v54 = vmul.f32 %v1329_v46, %v1329_v46  ;;  %v1394_v55 = vsel %vm1092_vm8, %v1329_v46, 0.0 }
 0x1d3   : > { %v1395_v57 = vadd.f32 %v1394_v55, %v1393_v59 }
 0x1d4   : > { %1365 = vst.msk [vmem:[%s2496_s8 + $0x38] sm:$0xf] %vm1350_vm2, %v1348_v52  ;;  %v1447_v7 = vsel %vm1092_vm8, %v1418_v54, 0.0 }
 0x1d5   : > { %v1448_v13 = vadd.f32 %v1447_v7, %v1446_v53 }
 0x1d9   : > { %v1331_v51 = vpop.f32.mrf.mxu3 }
 0x1da   : > { %v1349_v14 = vpack.c.bf16 %v1331_v51, %v1331_v51  ;;  %v1396_v26 = vsel %vm1092_vm8, %v1331_v51, 0.0  ;;  %v1419_v58 = vmul.f32 %v1331_v51, %v1331_v51 }
 0x1db   : > { %v1397_v62 = vadd.f32 %v1396_v26, %v1395_v57 }
 0x1dc   : > { %1366 = vst.msk [vmem:[%s2496_s8 + $0x3c] sm:$0xf] %vm1350_vm2, %v1349_v14  ;;  %v1449_v6 = vsel %vm1092_vm8, %v1419_v58, 0.0 }
 0x1dd   : > { %v1398_v63 = vrot.slane %v1397_v62, 4  ;;  %v1450_v2 = vadd.f32 %v1449_v6, %v1448_v13 }
 0x1df   : > { %v1399_v4 = vadd.f32 %v1398_v63, %v1397_v62  ;;  %v1451_v5 = vrot.slane %v1450_v2, 4 }
 0x1e1   : > { %v1400_v42 = vrot.slane %v1399_v4, 2  ;;  %v1452_v41 = vadd.f32 %v1451_v5, %v1450_v2 }
 0x1e3   : > { %v1401_v31 = vadd.f32 %v1400_v42, %v1399_v4  ;;  %v1453_v10 = vrot.slane %v1452_v41, 2 }
 0x1e5   : > { %v1402_v11 = vrot.slane %v1401_v31, 1  ;;  %v1454_v0 = vadd.f32 %v1453_v10, %v1452_v41 }
 0x1e7   : > { %v1455_v15 = vrot.slane %v1454_v0, 1  ;;  %v1403_v16 = vadd.f32 %v1402_v11, %v1401_v31 }
 0x1e9   : > { %v1456_v18 = vadd.f32 %v1455_v15, %v1454_v0 }
 0x1eb   : > { %v1458_v24 = vsel %vm769_vm0, %v1403_v16, %v1456_v18 }
 0x1ec   : > { %1460 = vst.msk [vmem:[%s467_s16] sm:$0x3] %vm1459_vm3, %v1458_v24 }
 0x1ed PF: > { %s18_s28 = sadd.s32 1, %s1875_s28   ;;  %s2598_s24 = smov %s1867_s26 }
 0x1ee   : > { %p15_p12 = scmp.ge.s32.totalorder %s18_s28, 6   ;;  %s2599_s25 = smov %s1871_s27 }
 0x1ef   : > { %s2600_s26 = smov %s2603_s29  ;;  %s2601_s27 = smov %s2607_s30 }
 0x1f0   :  { %17 = sbr.rel (!%p15_p12) target bundleno = 3 (0x3), region = 92 }

</bundles_post_ra>
